<compile_context>
chip_gen: v6e
topology: v6e:2x2x1
jax: 0.10.0
libtpu: 0.0.40
codegen_flags: <defaults>
</compile_context>

<pallas_src>
import functools

import jax
import jax.numpy as jnp
from jax.experimental import pallas as pl
from jax.experimental.pallas import tpu as pltpu

LANE = 128  # lane width; all weight output dims / activations are padded to this


# ------------------------------- kernel --------------------------------------

def _relu(x):
    return jnp.maximum(x, 0.0)


def propmodule_kernel(state_ref, rr_ref, rrt_ref, rst_ref, ra_ref,
                      w_ref, b_ref, out_ref, *, pstep, offs):
    Bb, N, Din = state_ref.shape
    M = rr_ref.shape[2]
    Drel = ra_ref.shape[2]
    f32 = jnp.float32

    def W(name):
        o, r = offs[name]                      # static offsets (multiples of 8)
        return w_ref[o:o + r, :]               # [r, 128] lane-dense weight block

    biases = b_ref[...]                        # [16, 128] (10 rows used)

    def Bvec(i):
        return biases[i:i + 1, :]              # [1, 128], broadcasts over rows

    def mm(x, w):
        return jnp.dot(x, w, preferred_element_type=f32)

    def bmm(a, b):                             # canonical batched matmul (MXU)
        return jnp.einsum('bij,bjk->bik', a, b, preferred_element_type=f32)

    s3 = state_ref[...]                        # [Bb, N, Din]
    rr = rr_ref[...]                           # [Bb, N, M]
    rr_t = rrt_ref[...]                        # [Bb, M, N] (transposed in wrapper)
    rs_t = rst_ref[...]                        # [Bb, M, N]

    s2 = s3.reshape(Bb * N, Din)
    ra2 = ra_ref[...].reshape(Bb * M, Drel)

    # state_r = Rr^T @ state, state_s = Rs^T @ state, flattened to row slabs
    state_r = bmm(rr_t, s3).reshape(Bb * M, Din)
    state_s = bmm(rs_t, s3).reshape(Bb * M, Din)

    # particle encoder: relu(L2(relu(L1(relu(L0(x))))))  on [Bb*N, :]
    pe = _relu(mm(s2, W('pe_w0')) + Bvec(0))
    pe = _relu(mm(pe, W('pe_w1')) + Bvec(1))
    particle_encode = _relu(mm(pe, W('pe_w2')) + Bvec(2))          # [Bb*N, 128]

    # relation encoder on concat([state_r, state_s, Ra]) -> K-split matmuls
    re = _relu(mm(state_r, W('re_w0a')) + mm(state_s, W('re_w0b'))
               + mm(ra2, W('re_w0c')) + Bvec(3))
    re = _relu(mm(re, W('re_w1')) + Bvec(4))
    relation_encode = _relu(mm(re, W('re_w2')) + Bvec(5))          # [Bb*M, 128]

    # loop-invariant partial products of the two propagators (hoisted)
    rel_base = mm(relation_encode, W('rp_wa')) + Bvec(6)           # [Bb*M, 128]
    par_base = mm(particle_encode, W('pp_wa')) + Bvec(7)           # [Bb*N, 128]

    particle_effect0 = jnp.zeros((Bb * N, LANE), f32)

    def step(_, peff):
        p3 = peff.reshape(Bb, N, LANE)
        effect_r = bmm(rr_t, p3).reshape(Bb * M, LANE)
        effect_s = bmm(rs_t, p3).reshape(Bb * M, LANE)
        # relation propagator: relu(concat([rel_enc, eff_r, eff_s]) @ W + b)
        relation_effect = _relu(rel_base
                                + mm(effect_r, W('rp_wb'))
                                + mm(effect_s, W('rp_wc')))        # [Bb*M, 128]
        effect_agg = bmm(rr, relation_effect.reshape(Bb, M, LANE)
                         ).reshape(Bb * N, LANE)
        # particle propagator (residual=False): relu(concat([p_enc, agg]) @ W + b)
        return _relu(par_base + mm(effect_agg, W('pp_wb')))        # [Bb*N, 128]

    particle_effect = jax.lax.fori_loop(0, pstep, step, particle_effect0,
                                        unroll=True)

    # particle predictor: linear1(relu(linear0(x)))
    h = _relu(mm(particle_effect, W('pr_w0')) + Bvec(8))
    pred = mm(h, W('pr_w1')) + Bvec(9)                             # [Bb*N, 128]
    out_ref[...] = pred.reshape(Bb, N, LANE).astype(out_ref.dtype)


# --------------------------- parameter packing --------------------------------

def pack_params(params, *, input_dim, relation_dim, nf_relation, nf_effect):
    """Pack the 20 weight/bias arrays into one lane-dense weight slab [R,128]
    and one bias slab [16,128], splitting concat-consuming weights by segment.
    Zero padding keeps all padded activation lanes exactly zero."""
    (pe_w0, pe_b0, pe_w1, pe_b1, pe_w2, pe_b2,
     re_w0, re_b0, re_w1, re_b1, re_w2, re_b2,
     rp_w, rp_b, pp_w, pp_b,
     pr_w0, pr_b0, pr_w1, pr_b1) = params
    Din, Drel, NFr, E = input_dim, relation_dim, nf_relation, nf_effect

    def pad_w(w, rows=LANE):
        r, c = w.shape
        assert c <= LANE
        rows = -(-max(rows, r) // 8) * 8       # sublane-aligned row count
        return jnp.pad(w.astype(jnp.float32), ((0, rows - r), (0, LANE - c)))

    entries = [
        # particle encoder (first layer keeps real K=Din; later layers K=128)
        ('pe_w0', pad_w(pe_w0, Din)),
        ('pe_w1', pad_w(pe_w1)),
        ('pe_w2', pad_w(pe_w2)),
        # relation encoder first layer, K-split of concat([state_r, state_s, Ra])
        ('re_w0a', pad_w(re_w0[:Din], Din)),
        ('re_w0b', pad_w(re_w0[Din:2 * Din], Din)),
        ('re_w0c', pad_w(re_w0[2 * Din:], Drel)),
        ('re_w1', pad_w(re_w1)),
        ('re_w2', pad_w(re_w2)),
        # relation propagator, K-split of concat([rel_enc, effect_r, effect_s])
        ('rp_wa', pad_w(rp_w[:NFr])),
        ('rp_wb', pad_w(rp_w[NFr:NFr + E])),
        ('rp_wc', pad_w(rp_w[NFr + E:])),
        # particle propagator, K-split of concat([particle_enc, effect_agg])
        ('pp_wa', pad_w(pp_w[:E])),
        ('pp_wb', pad_w(pp_w[E:])),
        # particle predictor (pr_w1/pr_b1 cols zero-padded -> lane-dense output)
        ('pr_w0', pad_w(pr_w0)),
        ('pr_w1', pad_w(pr_w1)),
    ]
    offs, blocks, o = {}, [], 0
    for name, w in entries:
        offs[name] = (o, w.shape[0])
        blocks.append(w)
        o += w.shape[0]
    w_slab = jnp.concatenate(blocks, axis=0)

    biases = [pe_b0, pe_b1, pe_b2, re_b0, re_b1, re_b2, rp_b, pp_b, pr_b0, pr_b1]
    b_rows = [jnp.pad(b.astype(jnp.float32), ((0, 0), (0, LANE - b.shape[1])))
              for b in biases]
    n_pad = -(-len(b_rows) // 8) * 8 - len(b_rows)
    b_slab = jnp.concatenate(b_rows + [jnp.zeros((n_pad, LANE), jnp.float32)],
                             axis=0)
    return w_slab, b_slab, offs


# ------------------------------ wrapper ---------------------------------------

def prop_module_forward(state, Rr, Rs, Ra, params, *, pstep,
                        nf_relation, nf_effect, output_dim, batch_block=None):
    B, N, Din = state.shape
    M = Rr.shape[2]
    Drel = Ra.shape[2]

    if batch_block is None:
        # Fuse the whole batch into one grid step (amortize ~0.35us/step
        # pipeline overhead, fill sublanes with B*N / B*M rows).
        # On v7x pass batch_block=B//2 (B even) so both TensorCores get work.
        batch_block = B
    assert B % batch_block == 0
    grid = (B // batch_block,)

    # Transpose the relation matrices once in the wrapper so every in-kernel
    # contraction is a canonical batched matmul (no in-kernel XLU transposes).
    Rr_t = jnp.swapaxes(Rr, 1, 2)
    Rs_t = jnp.swapaxes(Rs, 1, 2)

    w_slab, b_slab, offs = pack_params(
        params, input_dim=Din, relation_dim=Drel,
        nf_relation=nf_relation, nf_effect=nf_effect)
    Rw, Rb = w_slab.shape[0], b_slab.shape[0]

    kernel = functools.partial(propmodule_kernel, pstep=pstep, offs=offs)

    out_padded = pl.pallas_call(
        kernel,
        out_shape=jax.ShapeDtypeStruct((B, N, LANE), jnp.float32),
        grid=grid,
        in_specs=[
            pl.BlockSpec((batch_block, N, Din), lambda g: (g, 0, 0)),   # state
            pl.BlockSpec((batch_block, N, M), lambda g: (g, 0, 0)),     # Rr
            pl.BlockSpec((batch_block, M, N), lambda g: (g, 0, 0)),     # Rr^T
            pl.BlockSpec((batch_block, M, N), lambda g: (g, 0, 0)),     # Rs^T
            pl.BlockSpec((batch_block, M, Drel), lambda g: (g, 0, 0)),  # Ra
            pl.BlockSpec((Rw, LANE), lambda g: (0, 0)),                 # weight slab
            pl.BlockSpec((Rb, LANE), lambda g: (0, 0)),                 # bias slab
        ],
        out_specs=pl.BlockSpec((batch_block, N, LANE), lambda g: (g, 0, 0)),
        compiler_params=pltpu.CompilerParams(
            dimension_semantics=("parallel",)),
    )(state, Rr, Rr_t, Rs_t, Ra, w_slab, b_slab)

    # strip the lane padding (kernel wrote a lane-dense 128-wide slab)
    return out_padded[..., :output_dim]


# --------------------------- parameter init ------------------------------------

def init_linear(key, in_dim, out_dim):
    # mimics torch.nn.Linear default init: U(-1/sqrt(fan_in), 1/sqrt(fan_in))
    kw, kb = jax.random.split(key)
    bound = 1.0 / (in_dim ** 0.5)
    w = jax.random.uniform(kw, (in_dim, out_dim), jnp.float32, -bound, bound)
    b = jax.random.uniform(kb, (1, out_dim), jnp.float32, -bound, bound)
    return w, b


def build_params(key, input_dim, relation_dim, nf_particle, nf_relation,
                 nf_effect, output_dim):
    keys = jax.random.split(key, 10)
    params = []
    # particle encoder: input_dim -> nf_particle -> nf_particle -> nf_effect
    params += init_linear(keys[0], input_dim, nf_particle)
    params += init_linear(keys[1], nf_particle, nf_particle)
    params += init_linear(keys[2], nf_particle, nf_effect)
    # relation encoder: 2*input_dim + relation_dim -> nf_relation -> nf_relation -> nf_relation
    params += init_linear(keys[3], 2 * input_dim + relation_dim, nf_relation)
    params += init_linear(keys[4], nf_relation, nf_relation)
    params += init_linear(keys[5], nf_relation, nf_relation)
    # relation propagator: nf_relation + 2*nf_effect -> nf_effect
    params += init_linear(keys[6], nf_relation + 2 * nf_effect, nf_effect)
    # particle propagator: 2*nf_effect -> nf_effect
    params += init_linear(keys[7], 2 * nf_effect, nf_effect)
    # particle predictor: nf_effect -> nf_effect -> output_dim
    params += init_linear(keys[8], nf_effect, nf_effect)
    params += init_linear(keys[9], nf_effect, output_dim)
    return params


# ------------------------- pure-JAX reference ----------------------------------

def reference_forward(state, Rr, Rs, Ra, params, *, pstep, nf_effect):
    (pe_w0, pe_b0, pe_w1, pe_b1, pe_w2, pe_b2,
     re_w0, re_b0, re_w1, re_b1, re_w2, re_b2,
     rp_w, rp_b, pp_w, pp_b,
     pr_w0, pr_b0, pr_w1, pr_b1) = params

    def mlp3(x, w0, b0, w1, b1, w2, b2):
        x = jnp.maximum(x @ w0 + b0, 0)
        x = jnp.maximum(x @ w1 + b1, 0)
        return jnp.maximum(x @ w2 + b2, 0)

    Rrp = jnp.swapaxes(Rr, 1, 2)
    Rsp = jnp.swapaxes(Rs, 1, 2)
    state_r = Rrp @ state
    state_s = Rsp @ state
    particle_encode = mlp3(state, pe_w0, pe_b0, pe_w1, pe_b1, pe_w2, pe_b2)
    relation_encode = mlp3(jnp.concatenate([state_r, state_s, Ra], -1),
                           re_w0, re_b0, re_w1, re_b1, re_w2, re_b2)
    B, N, _ = state.shape
    particle_effect = jnp.zeros((B, N, nf_effect), jnp.float32)
    for _ in range(pstep):
        effect_r = Rrp @ particle_effect
        effect_s = Rsp @ particle_effect
        relation_effect = jnp.maximum(
            jnp.concatenate([relation_encode, effect_r, effect_s], -1) @ rp_w + rp_b, 0)
        effect_agg = Rr @ relation_effect
        particle_effect = jnp.maximum(
            jnp.concatenate([particle_encode, effect_agg], -1) @ pp_w + pp_b, 0)
    h = jnp.maximum(particle_effect @ pr_w0 + pr_b0, 0)
    return h @ pr_w1 + pr_b1


# ---------------------------------- main ----------------------------------------

if __name__ == "__main__":
    # small config consistent with PropModule.__init__
    B, N, M = 2, 8, 16           # batch, particles, relations
    input_dim = 16               # state feature dim fed to particle encoder
    relation_dim = 8
    nf_particle = 32
    nf_relation = 32
    nf_effect = 32
    output_dim = 16
    pstep = 2

    key = jax.random.PRNGKey(0)
    k_state, k_rr, k_rs, k_ra, k_params = jax.random.split(key, 5)

    state = jax.random.normal(k_state, (B, N, input_dim), jnp.float32)
    Rr = (jax.random.uniform(k_rr, (B, N, M)) > 0.7).astype(jnp.float32)
    Rs = (jax.random.uniform(k_rs, (B, N, M)) > 0.7).astype(jnp.float32)
    Ra = jax.random.normal(k_ra, (B, M, relation_dim), jnp.float32)

    params = build_params(k_params, input_dim, relation_dim,
                          nf_particle, nf_relation, nf_effect, output_dim)

    pred = prop_module_forward(state, Rr, Rs, Ra, params,
                               pstep=pstep, nf_relation=nf_relation,
                               nf_effect=nf_effect, output_dim=output_dim)
    pred = jax.block_until_ready(pred)

    ref = reference_forward(state, Rr, Rs, Ra, params,
                            pstep=pstep, nf_effect=nf_effect)
    ref = jax.block_until_ready(ref)

    assert pred.shape == (B, N, output_dim)
    assert jnp.allclose(pred, ref, rtol=1e-4, atol=1e-4), "mismatch vs reference"
    print("KERNEL_OK")
</pallas_src>

<mosaic_0001>
module attributes {stable_mosaic.version = 11 : i64} {
  func.func @propmodule_kernel(%arg0: i32, %arg1: memref<2x8x16xf32, #tpu.memory_space<vmem>>, %arg2: memref<2x8x16xf32, #tpu.memory_space<vmem>>, %arg3: memref<2x16x8xf32, #tpu.memory_space<vmem>>, %arg4: memref<2x16x8xf32, #tpu.memory_space<vmem>>, %arg5: memref<2x16x8xf32, #tpu.memory_space<vmem>>, %arg6: memref<1464x128xf32, #tpu.memory_space<vmem>>, %arg7: memref<16x128xf32, #tpu.memory_space<vmem>>, %arg8: memref<2x8x128xf32, #tpu.memory_space<vmem>>) attributes {dimension_semantics = [#tpu.dimension_semantics<parallel>], iteration_bounds = array<i64: 1>, scalar_prefetch = 0 : i64, scratch_operands = 0 : i64, tpu.core_type = #tpu.core_type<tc>, window_params = [{transform_indices = @transform_0, window_bounds = array<i64: 2, 8, 16>}, {transform_indices = @transform_1, window_bounds = array<i64: 2, 8, 16>}, {transform_indices = @transform_2, window_bounds = array<i64: 2, 16, 8>}, {transform_indices = @transform_3, window_bounds = array<i64: 2, 16, 8>}, {transform_indices = @transform_4, window_bounds = array<i64: 2, 16, 8>}, {pipeline_mode = #tpu.pipeline_mode<synchronous>, transform_indices = @transform_5, window_bounds = array<i64: 1464, 128>}, {pipeline_mode = #tpu.pipeline_mode<synchronous>, transform_indices = @transform_6, window_bounds = array<i64: 16, 128>}, {transform_indices = @transform_7, window_bounds = array<i64: 2, 8, 128>}]} {
    %c0 = arith.constant 0 : index
    %c0_0 = arith.constant 0 : index
    %0 = vector.load %arg7[%c0, %c0_0] : memref<16x128xf32, #tpu.memory_space<vmem>>, vector<16x128xf32>
    %c0_1 = arith.constant 0 : index
    %c0_2 = arith.constant 0 : index
    %c0_3 = arith.constant 0 : index
    %1 = vector.load %arg1[%c0_1, %c0_2, %c0_3] : memref<2x8x16xf32, #tpu.memory_space<vmem>>, vector<2x8x16xf32>
    %c0_4 = arith.constant 0 : index
    %c0_5 = arith.constant 0 : index
    %c0_6 = arith.constant 0 : index
    %2 = vector.load %arg2[%c0_4, %c0_5, %c0_6] : memref<2x8x16xf32, #tpu.memory_space<vmem>>, vector<2x8x16xf32>
    %c0_7 = arith.constant 0 : index
    %c0_8 = arith.constant 0 : index
    %c0_9 = arith.constant 0 : index
    %3 = vector.load %arg3[%c0_7, %c0_8, %c0_9] : memref<2x16x8xf32, #tpu.memory_space<vmem>>, vector<2x16x8xf32>
    %c0_10 = arith.constant 0 : index
    %c0_11 = arith.constant 0 : index
    %c0_12 = arith.constant 0 : index
    %4 = vector.load %arg4[%c0_10, %c0_11, %c0_12] : memref<2x16x8xf32, #tpu.memory_space<vmem>>, vector<2x16x8xf32>
    %5 = vector.shape_cast %1 : vector<2x8x16xf32> to vector<16x16xf32>
    %c0_13 = arith.constant 0 : index
    %c0_14 = arith.constant 0 : index
    %c0_15 = arith.constant 0 : index
    %6 = vector.load %arg5[%c0_13, %c0_14, %c0_15] : memref<2x16x8xf32, #tpu.memory_space<vmem>>, vector<2x16x8xf32>
    %7 = vector.shape_cast %6 : vector<2x16x8xf32> to vector<32x8xf32>
    "tpu.trace_start"() <{level = 10 : i32, message = "bij,bjk->bik"}> : () -> ()
    %cst = arith.constant dense<0.000000e+00> : vector<2x16x16xf32>
    %8 = tpu.matmul %3, %1, %cst {dimension_numbers = #tpu.dot_dimension_numbers<[2], [1], [1], [2], [0, 0, 0, 1, 1, 2], [0], [0]>} : vector<2x16x8xf32>, vector<2x8x16xf32>, vector<2x16x16xf32> -> vector<2x16x16xf32>
    "tpu.trace_stop"() : () -> ()
    %9 = vector.shape_cast %8 : vector<2x16x16xf32> to vector<32x16xf32>
    "tpu.trace_start"() <{level = 10 : i32, message = "bij,bjk->bik"}> : () -> ()
    %cst_16 = arith.constant dense<0.000000e+00> : vector<2x16x16xf32>
    %10 = tpu.matmul %4, %1, %cst_16 {dimension_numbers = #tpu.dot_dimension_numbers<[2], [1], [1], [2], [0, 0, 0, 1, 1, 2], [0], [0]>} : vector<2x16x8xf32>, vector<2x8x16xf32>, vector<2x16x16xf32> -> vector<2x16x16xf32>
    "tpu.trace_stop"() : () -> ()
    %11 = vector.shape_cast %10 : vector<2x16x16xf32> to vector<32x16xf32>
    %c0_17 = arith.constant 0 : index
    %c0_18 = arith.constant 0 : index
    %12 = vector.load %arg6[%c0_17, %c0_18] : memref<1464x128xf32, #tpu.memory_space<vmem>>, vector<16x128xf32>
    %cst_19 = arith.constant dense<0.000000e+00> : vector<16x128xf32>
    %13 = tpu.matmul %5, %12, %cst_19 {dimension_numbers = #tpu.dot_dimension_numbers<[1], [0], [0], [1], [0, 0, 1, 1], [], []>} : vector<16x16xf32>, vector<16x128xf32>, vector<16x128xf32> -> vector<16x128xf32>
    %14 = vector.extract_strided_slice %0 {offsets = [0, 0], sizes = [1, 128], strides = [1, 1]} : vector<16x128xf32> to vector<1x128xf32>
    %15 = vector.broadcast %14 : vector<1x128xf32> to vector<16x128xf32>
    %16 = arith.addf %13, %15 : vector<16x128xf32>
    %cst_20 = arith.constant 0.000000e+00 : f32
    %17 = vector.broadcast %cst_20 : f32 to vector<16x128xf32>
    %18 = arith.maximumf %16, %17 : vector<16x128xf32>
    %c16 = arith.constant 16 : index
    %c0_21 = arith.constant 0 : index
    %19 = vector.load %arg6[%c16, %c0_21] : memref<1464x128xf32, #tpu.memory_space<vmem>>, vector<128x128xf32>
    %cst_22 = arith.constant dense<0.000000e+00> : vector<16x128xf32>
    %20 = tpu.matmul %18, %19, %cst_22 {dimension_numbers = #tpu.dot_dimension_numbers<[1], [0], [0], [1], [0, 0, 1, 1], [], []>} : vector<16x128xf32>, vector<128x128xf32>, vector<16x128xf32> -> vector<16x128xf32>
    %21 = vector.extract_strided_slice %0 {offsets = [1, 0], sizes = [1, 128], strides = [1, 1]} : vector<16x128xf32> to vector<1x128xf32>
    %22 = vector.broadcast %21 : vector<1x128xf32> to vector<16x128xf32>
    %23 = arith.addf %20, %22 : vector<16x128xf32>
    %cst_23 = arith.constant 0.000000e+00 : f32
    %24 = vector.broadcast %cst_23 : f32 to vector<16x128xf32>
    %25 = arith.maximumf %23, %24 : vector<16x128xf32>
    %c144 = arith.constant 144 : index
    %c0_24 = arith.constant 0 : index
    %26 = vector.load %arg6[%c144, %c0_24] : memref<1464x128xf32, #tpu.memory_space<vmem>>, vector<128x128xf32>
    %cst_25 = arith.constant dense<0.000000e+00> : vector<16x128xf32>
    %27 = tpu.matmul %25, %26, %cst_25 {dimension_numbers = #tpu.dot_dimension_numbers<[1], [0], [0], [1], [0, 0, 1, 1], [], []>} : vector<16x128xf32>, vector<128x128xf32>, vector<16x128xf32> -> vector<16x128xf32>
    %28 = vector.extract_strided_slice %0 {offsets = [2, 0], sizes = [1, 128], strides = [1, 1]} : vector<16x128xf32> to vector<1x128xf32>
    %29 = vector.broadcast %28 : vector<1x128xf32> to vector<16x128xf32>
    %30 = arith.addf %27, %29 : vector<16x128xf32>
    %cst_26 = arith.constant 0.000000e+00 : f32
    %31 = vector.broadcast %cst_26 : f32 to vector<16x128xf32>
    %32 = arith.maximumf %30, %31 : vector<16x128xf32>
    %c272 = arith.constant 272 : index
    %c0_27 = arith.constant 0 : index
    %33 = vector.load %arg6[%c272, %c0_27] : memref<1464x128xf32, #tpu.memory_space<vmem>>, vector<16x128xf32>
    %cst_28 = arith.constant dense<0.000000e+00> : vector<32x128xf32>
    %34 = tpu.matmul %9, %33, %cst_28 {dimension_numbers = #tpu.dot_dimension_numbers<[1], [0], [0], [1], [0, 0, 1, 1], [], []>} : vector<32x16xf32>, vector<16x128xf32>, vector<32x128xf32> -> vector<32x128xf32>
    %c288 = arith.constant 288 : index
    %c0_29 = arith.constant 0 : index
    %35 = vector.load %arg6[%c288, %c0_29] : memref<1464x128xf32, #tpu.memory_space<vmem>>, vector<16x128xf32>
    %cst_30 = arith.constant dense<0.000000e+00> : vector<32x128xf32>
    %36 = tpu.matmul %11, %35, %cst_30 {dimension_numbers = #tpu.dot_dimension_numbers<[1], [0], [0], [1], [0, 0, 1, 1], [], []>} : vector<32x16xf32>, vector<16x128xf32>, vector<32x128xf32> -> vector<32x128xf32>
    %37 = arith.addf %34, %36 : vector<32x128xf32>
    %c304 = arith.constant 304 : index
    %c0_31 = arith.constant 0 : index
    %38 = vector.load %arg6[%c304, %c0_31] : memref<1464x128xf32, #tpu.memory_space<vmem>>, vector<8x128xf32>
    %cst_32 = arith.constant dense<0.000000e+00> : vector<32x128xf32>
    %39 = tpu.matmul %7, %38, %cst_32 {dimension_numbers = #tpu.dot_dimension_numbers<[1], [0], [0], [1], [0, 0, 1, 1], [], []>} : vector<32x8xf32>, vector<8x128xf32>, vector<32x128xf32> -> vector<32x128xf32>
    %40 = arith.addf %37, %39 : vector<32x128xf32>
    %41 = vector.extract_strided_slice %0 {offsets = [3, 0], sizes = [1, 128], strides = [1, 1]} : vector<16x128xf32> to vector<1x128xf32>
    %42 = vector.broadcast %41 : vector<1x128xf32> to vector<32x128xf32>
    %43 = arith.addf %40, %42 : vector<32x128xf32>
    %cst_33 = arith.constant 0.000000e+00 : f32
    %44 = vector.broadcast %cst_33 : f32 to vector<32x128xf32>
    %45 = arith.maximumf %43, %44 : vector<32x128xf32>
    %c312 = arith.constant 312 : index
    %c0_34 = arith.constant 0 : index
    %46 = vector.load %arg6[%c312, %c0_34] : memref<1464x128xf32, #tpu.memory_space<vmem>>, vector<128x128xf32>
    %cst_35 = arith.constant dense<0.000000e+00> : vector<32x128xf32>
    %47 = tpu.matmul %45, %46, %cst_35 {dimension_numbers = #tpu.dot_dimension_numbers<[1], [0], [0], [1], [0, 0, 1, 1], [], []>} : vector<32x128xf32>, vector<128x128xf32>, vector<32x128xf32> -> vector<32x128xf32>
    %48 = vector.extract_strided_slice %0 {offsets = [4, 0], sizes = [1, 128], strides = [1, 1]} : vector<16x128xf32> to vector<1x128xf32>
    %49 = vector.broadcast %48 : vector<1x128xf32> to vector<32x128xf32>
    %50 = arith.addf %47, %49 : vector<32x128xf32>
    %cst_36 = arith.constant 0.000000e+00 : f32
    %51 = vector.broadcast %cst_36 : f32 to vector<32x128xf32>
    %52 = arith.maximumf %50, %51 : vector<32x128xf32>
    %c440 = arith.constant 440 : index
    %c0_37 = arith.constant 0 : index
    %53 = vector.load %arg6[%c440, %c0_37] : memref<1464x128xf32, #tpu.memory_space<vmem>>, vector<128x128xf32>
    %cst_38 = arith.constant dense<0.000000e+00> : vector<32x128xf32>
    %54 = tpu.matmul %52, %53, %cst_38 {dimension_numbers = #tpu.dot_dimension_numbers<[1], [0], [0], [1], [0, 0, 1, 1], [], []>} : vector<32x128xf32>, vector<128x128xf32>, vector<32x128xf32> -> vector<32x128xf32>
    %55 = vector.extract_strided_slice %0 {offsets = [5, 0], sizes = [1, 128], strides = [1, 1]} : vector<16x128xf32> to vector<1x128xf32>
    %56 = vector.broadcast %55 : vector<1x128xf32> to vector<32x128xf32>
    %57 = arith.addf %54, %56 : vector<32x128xf32>
    %cst_39 = arith.constant 0.000000e+00 : f32
    %58 = vector.broadcast %cst_39 : f32 to vector<32x128xf32>
    %59 = arith.maximumf %57, %58 : vector<32x128xf32>
    %c568 = arith.constant 568 : index
    %c0_40 = arith.constant 0 : index
    %60 = vector.load %arg6[%c568, %c0_40] : memref<1464x128xf32, #tpu.memory_space<vmem>>, vector<128x128xf32>
    %cst_41 = arith.constant dense<0.000000e+00> : vector<32x128xf32>
    %61 = tpu.matmul %59, %60, %cst_41 {dimension_numbers = #tpu.dot_dimension_numbers<[1], [0], [0], [1], [0, 0, 1, 1], [], []>} : vector<32x128xf32>, vector<128x128xf32>, vector<32x128xf32> -> vector<32x128xf32>
    %62 = vector.extract_strided_slice %0 {offsets = [6, 0], sizes = [1, 128], strides = [1, 1]} : vector<16x128xf32> to vector<1x128xf32>
    %63 = vector.broadcast %62 : vector<1x128xf32> to vector<32x128xf32>
    %64 = arith.addf %61, %63 : vector<32x128xf32>
    %c952 = arith.constant 952 : index
    %c0_42 = arith.constant 0 : index
    %65 = vector.load %arg6[%c952, %c0_42] : memref<1464x128xf32, #tpu.memory_space<vmem>>, vector<128x128xf32>
    %cst_43 = arith.constant dense<0.000000e+00> : vector<16x128xf32>
    %66 = tpu.matmul %32, %65, %cst_43 {dimension_numbers = #tpu.dot_dimension_numbers<[1], [0], [0], [1], [0, 0, 1, 1], [], []>} : vector<16x128xf32>, vector<128x128xf32>, vector<16x128xf32> -> vector<16x128xf32>
    %67 = vector.extract_strided_slice %0 {offsets = [7, 0], sizes = [1, 128], strides = [1, 1]} : vector<16x128xf32> to vector<1x128xf32>
    %68 = vector.broadcast %67 : vector<1x128xf32> to vector<16x128xf32>
    %69 = arith.addf %66, %68 : vector<16x128xf32>
    %cst_44 = arith.constant 0.000000e+00 : f32
    %70 = vector.broadcast %cst_44 : f32 to vector<16x128xf32>
    %c0_i32 = arith.constant 0 : i32
    %71 = vector.shape_cast %70 : vector<16x128xf32> to vector<2x8x128xf32>
    "tpu.trace_start"() <{level = 10 : i32, message = "bij,bjk->bik"}> : () -> ()
    %cst_45 = arith.constant dense<0.000000e+00> : vector<2x16x128xf32>
    %72 = tpu.matmul %3, %71, %cst_45 {dimension_numbers = #tpu.dot_dimension_numbers<[2], [1], [1], [2], [0, 0, 0, 1, 1, 2], [0], [0]>} : vector<2x16x8xf32>, vector<2x8x128xf32>, vector<2x16x128xf32> -> vector<2x16x128xf32>
    "tpu.trace_stop"() : () -> ()
    %73 = vector.shape_cast %72 : vector<2x16x128xf32> to vector<32x128xf32>
    "tpu.trace_start"() <{level = 10 : i32, message = "bij,bjk->bik"}> : () -> ()
    %cst_46 = arith.constant dense<0.000000e+00> : vector<2x16x128xf32>
    %74 = tpu.matmul %4, %71, %cst_46 {dimension_numbers = #tpu.dot_dimension_numbers<[2], [1], [1], [2], [0, 0, 0, 1, 1, 2], [0], [0]>} : vector<2x16x8xf32>, vector<2x8x128xf32>, vector<2x16x128xf32> -> vector<2x16x128xf32>
    "tpu.trace_stop"() : () -> ()
    %75 = vector.shape_cast %74 : vector<2x16x128xf32> to vector<32x128xf32>
    %c696 = arith.constant 696 : index
    %c0_47 = arith.constant 0 : index
    %76 = vector.load %arg6[%c696, %c0_47] : memref<1464x128xf32, #tpu.memory_space<vmem>>, vector<128x128xf32>
    %cst_48 = arith.constant dense<0.000000e+00> : vector<32x128xf32>
    %77 = tpu.matmul %73, %76, %cst_48 {dimension_numbers = #tpu.dot_dimension_numbers<[1], [0], [0], [1], [0, 0, 1, 1], [], []>} : vector<32x128xf32>, vector<128x128xf32>, vector<32x128xf32> -> vector<32x128xf32>
    %78 = arith.addf %64, %77 : vector<32x128xf32>
    %c824 = arith.constant 824 : index
    %c0_49 = arith.constant 0 : index
    %79 = vector.load %arg6[%c824, %c0_49] : memref<1464x128xf32, #tpu.memory_space<vmem>>, vector<128x128xf32>
    %cst_50 = arith.constant dense<0.000000e+00> : vector<32x128xf32>
    %80 = tpu.matmul %75, %79, %cst_50 {dimension_numbers = #tpu.dot_dimension_numbers<[1], [0], [0], [1], [0, 0, 1, 1], [], []>} : vector<32x128xf32>, vector<128x128xf32>, vector<32x128xf32> -> vector<32x128xf32>
    %81 = arith.addf %78, %80 : vector<32x128xf32>
    %cst_51 = arith.constant 0.000000e+00 : f32
    %82 = vector.broadcast %cst_51 : f32 to vector<32x128xf32>
    %83 = arith.maximumf %81, %82 : vector<32x128xf32>
    %84 = vector.shape_cast %83 : vector<32x128xf32> to vector<2x16x128xf32>
    "tpu.trace_start"() <{level = 10 : i32, message = "bij,bjk->bik"}> : () -> ()
    %cst_52 = arith.constant dense<0.000000e+00> : vector<2x8x128xf32>
    %85 = tpu.matmul %2, %84, %cst_52 {dimension_numbers = #tpu.dot_dimension_numbers<[2], [1], [1], [2], [0, 0, 0, 1, 1, 2], [0], [0]>} : vector<2x8x16xf32>, vector<2x16x128xf32>, vector<2x8x128xf32> -> vector<2x8x128xf32>
    "tpu.trace_stop"() : () -> ()
    %86 = vector.shape_cast %85 : vector<2x8x128xf32> to vector<16x128xf32>
    %c1080 = arith.constant 1080 : index
    %c0_53 = arith.constant 0 : index
    %87 = vector.load %arg6[%c1080, %c0_53] : memref<1464x128xf32, #tpu.memory_space<vmem>>, vector<128x128xf32>
    %cst_54 = arith.constant dense<0.000000e+00> : vector<16x128xf32>
    %88 = tpu.matmul %86, %87, %cst_54 {dimension_numbers = #tpu.dot_dimension_numbers<[1], [0], [0], [1], [0, 0, 1, 1], [], []>} : vector<16x128xf32>, vector<128x128xf32>, vector<16x128xf32> -> vector<16x128xf32>
    %89 = arith.addf %69, %88 : vector<16x128xf32>
    %cst_55 = arith.constant 0.000000e+00 : f32
    %90 = vector.broadcast %cst_55 : f32 to vector<16x128xf32>
    %91 = arith.maximumf %89, %90 : vector<16x128xf32>
    %c1_i32 = arith.constant 1 : i32
    %92 = vector.shape_cast %91 : vector<16x128xf32> to vector<2x8x128xf32>
    "tpu.trace_start"() <{level = 10 : i32, message = "bij,bjk->bik"}> : () -> ()
    %cst_56 = arith.constant dense<0.000000e+00> : vector<2x16x128xf32>
    %93 = tpu.matmul %3, %92, %cst_56 {dimension_numbers = #tpu.dot_dimension_numbers<[2], [1], [1], [2], [0, 0, 0, 1, 1, 2], [0], [0]>} : vector<2x16x8xf32>, vector<2x8x128xf32>, vector<2x16x128xf32> -> vector<2x16x128xf32>
    "tpu.trace_stop"() : () -> ()
    %94 = vector.shape_cast %93 : vector<2x16x128xf32> to vector<32x128xf32>
    "tpu.trace_start"() <{level = 10 : i32, message = "bij,bjk->bik"}> : () -> ()
    %cst_57 = arith.constant dense<0.000000e+00> : vector<2x16x128xf32>
    %95 = tpu.matmul %4, %92, %cst_57 {dimension_numbers = #tpu.dot_dimension_numbers<[2], [1], [1], [2], [0, 0, 0, 1, 1, 2], [0], [0]>} : vector<2x16x8xf32>, vector<2x8x128xf32>, vector<2x16x128xf32> -> vector<2x16x128xf32>
    "tpu.trace_stop"() : () -> ()
    %96 = vector.shape_cast %95 : vector<2x16x128xf32> to vector<32x128xf32>
    %c696_58 = arith.constant 696 : index
    %c0_59 = arith.constant 0 : index
    %97 = vector.load %arg6[%c696_58, %c0_59] : memref<1464x128xf32, #tpu.memory_space<vmem>>, vector<128x128xf32>
    %cst_60 = arith.constant dense<0.000000e+00> : vector<32x128xf32>
    %98 = tpu.matmul %94, %97, %cst_60 {dimension_numbers = #tpu.dot_dimension_numbers<[1], [0], [0], [1], [0, 0, 1, 1], [], []>} : vector<32x128xf32>, vector<128x128xf32>, vector<32x128xf32> -> vector<32x128xf32>
    %99 = arith.addf %64, %98 : vector<32x128xf32>
    %c824_61 = arith.constant 824 : index
    %c0_62 = arith.constant 0 : index
    %100 = vector.load %arg6[%c824_61, %c0_62] : memref<1464x128xf32, #tpu.memory_space<vmem>>, vector<128x128xf32>
    %cst_63 = arith.constant dense<0.000000e+00> : vector<32x128xf32>
    %101 = tpu.matmul %96, %100, %cst_63 {dimension_numbers = #tpu.dot_dimension_numbers<[1], [0], [0], [1], [0, 0, 1, 1], [], []>} : vector<32x128xf32>, vector<128x128xf32>, vector<32x128xf32> -> vector<32x128xf32>
    %102 = arith.addf %99, %101 : vector<32x128xf32>
    %cst_64 = arith.constant 0.000000e+00 : f32
    %103 = vector.broadcast %cst_64 : f32 to vector<32x128xf32>
    %104 = arith.maximumf %102, %103 : vector<32x128xf32>
    %105 = vector.shape_cast %104 : vector<32x128xf32> to vector<2x16x128xf32>
    "tpu.trace_start"() <{level = 10 : i32, message = "bij,bjk->bik"}> : () -> ()
    %cst_65 = arith.constant dense<0.000000e+00> : vector<2x8x128xf32>
    %106 = tpu.matmul %2, %105, %cst_65 {dimension_numbers = #tpu.dot_dimension_numbers<[2], [1], [1], [2], [0, 0, 0, 1, 1, 2], [0], [0]>} : vector<2x8x16xf32>, vector<2x16x128xf32>, vector<2x8x128xf32> -> vector<2x8x128xf32>
    "tpu.trace_stop"() : () -> ()
    %107 = vector.shape_cast %106 : vector<2x8x128xf32> to vector<16x128xf32>
    %c1080_66 = arith.constant 1080 : index
    %c0_67 = arith.constant 0 : index
    %108 = vector.load %arg6[%c1080_66, %c0_67] : memref<1464x128xf32, #tpu.memory_space<vmem>>, vector<128x128xf32>
    %cst_68 = arith.constant dense<0.000000e+00> : vector<16x128xf32>
    %109 = tpu.matmul %107, %108, %cst_68 {dimension_numbers = #tpu.dot_dimension_numbers<[1], [0], [0], [1], [0, 0, 1, 1], [], []>} : vector<16x128xf32>, vector<128x128xf32>, vector<16x128xf32> -> vector<16x128xf32>
    %110 = arith.addf %69, %109 : vector<16x128xf32>
    %cst_69 = arith.constant 0.000000e+00 : f32
    %111 = vector.broadcast %cst_69 : f32 to vector<16x128xf32>
    %112 = arith.maximumf %110, %111 : vector<16x128xf32>
    %c1208 = arith.constant 1208 : index
    %c0_70 = arith.constant 0 : index
    %113 = vector.load %arg6[%c1208, %c0_70] : memref<1464x128xf32, #tpu.memory_space<vmem>>, vector<128x128xf32>
    %cst_71 = arith.constant dense<0.000000e+00> : vector<16x128xf32>
    %114 = tpu.matmul %112, %113, %cst_71 {dimension_numbers = #tpu.dot_dimension_numbers<[1], [0], [0], [1], [0, 0, 1, 1], [], []>} : vector<16x128xf32>, vector<128x128xf32>, vector<16x128xf32> -> vector<16x128xf32>
    %115 = vector.extract_strided_slice %0 {offsets = [8, 0], sizes = [1, 128], strides = [1, 1]} : vector<16x128xf32> to vector<1x128xf32>
    %116 = vector.broadcast %115 : vector<1x128xf32> to vector<16x128xf32>
    %117 = arith.addf %114, %116 : vector<16x128xf32>
    %cst_72 = arith.constant 0.000000e+00 : f32
    %118 = vector.broadcast %cst_72 : f32 to vector<16x128xf32>
    %119 = arith.maximumf %117, %118 : vector<16x128xf32>
    %c1336 = arith.constant 1336 : index
    %c0_73 = arith.constant 0 : index
    %120 = vector.load %arg6[%c1336, %c0_73] : memref<1464x128xf32, #tpu.memory_space<vmem>>, vector<128x128xf32>
    %cst_74 = arith.constant dense<0.000000e+00> : vector<16x128xf32>
    %121 = tpu.matmul %119, %120, %cst_74 {dimension_numbers = #tpu.dot_dimension_numbers<[1], [0], [0], [1], [0, 0, 1, 1], [], []>} : vector<16x128xf32>, vector<128x128xf32>, vector<16x128xf32> -> vector<16x128xf32>
    %122 = vector.extract_strided_slice %0 {offsets = [9, 0], sizes = [1, 128], strides = [1, 1]} : vector<16x128xf32> to vector<1x128xf32>
    %123 = vector.broadcast %122 : vector<1x128xf32> to vector<16x128xf32>
    %124 = arith.addf %121, %123 : vector<16x128xf32>
    %125 = vector.shape_cast %124 : vector<16x128xf32> to vector<2x8x128xf32>
    %c0_75 = arith.constant 0 : index
    %c0_76 = arith.constant 0 : index
    %c0_77 = arith.constant 0 : index
    %126 = vector.load %arg8[%c0_75, %c0_76, %c0_77] : memref<2x8x128xf32, #tpu.memory_space<vmem>>, vector<2x8x128xf32>
    tpu.vector_store %arg8[%c0_75, %c0_76, %c0_77], %125 {strides = array<i32>} : memref<2x8x128xf32, #tpu.memory_space<vmem>>, vector<2x8x128xf32>,
    return
  }
  func.func @transform_0(%arg0: i32) -> (i32, i32, i32) {
    %c0_i32 = arith.constant 0 : i32
    %c0_i32_0 = arith.constant 0 : i32
    %c0_i32_1 = arith.constant 0 : i32
    return %arg0, %c0_i32, %c0_i32_0 : i32, i32, i32
  }
  func.func @transform_1(%arg0: i32) -> (i32, i32, i32) {
    %c0_i32 = arith.constant 0 : i32
    %c0_i32_0 = arith.constant 0 : i32
    %c0_i32_1 = arith.constant 0 : i32
    return %arg0, %c0_i32, %c0_i32_0 : i32, i32, i32
  }
  func.func @transform_2(%arg0: i32) -> (i32, i32, i32) {
    %c0_i32 = arith.constant 0 : i32
    %c0_i32_0 = arith.constant 0 : i32
    %c0_i32_1 = arith.constant 0 : i32
    return %arg0, %c0_i32, %c0_i32_0 : i32, i32, i32
  }
  func.func @transform_3(%arg0: i32) -> (i32, i32, i32) {
    %c0_i32 = arith.constant 0 : i32
    %c0_i32_0 = arith.constant 0 : i32
    %c0_i32_1 = arith.constant 0 : i32
    return %arg0, %c0_i32, %c0_i32_0 : i32, i32, i32
  }
  func.func @transform_4(%arg0: i32) -> (i32, i32, i32) {
    %c0_i32 = arith.constant 0 : i32
    %c0_i32_0 = arith.constant 0 : i32
    %c0_i32_1 = arith.constant 0 : i32
    return %arg0, %c0_i32, %c0_i32_0 : i32, i32, i32
  }
  func.func @transform_5(%arg0: i32) -> (i32, i32) {
    %c0_i32 = arith.constant 0 : i32
    %c0_i32_0 = arith.constant 0 : i32
    %c0_i32_1 = arith.constant 0 : i32
    return %c0_i32, %c0_i32_0 : i32, i32
  }
  func.func @transform_6(%arg0: i32) -> (i32, i32) {
    %c0_i32 = arith.constant 0 : i32
    %c0_i32_0 = arith.constant 0 : i32
    %c0_i32_1 = arith.constant 0 : i32
    return %c0_i32, %c0_i32_0 : i32, i32
  }
  func.func @transform_7(%arg0: i32) -> (i32, i32, i32) {
    %c0_i32 = arith.constant 0 : i32
    %c0_i32_0 = arith.constant 0 : i32
    %c0_i32_1 = arith.constant 0 : i32
    return %arg0, %c0_i32, %c0_i32_0 : i32, i32, i32
  }
}

</mosaic_0001>

<bundles_post_ra>
// kernel: tpu_custom_call.1
= control target key start
LH: loop header
LB: loop body
LE: loop exit
PB: predicated region body
PF: predicated region fallthrough
CT: control target
= control target key end

     0   :  { %12 = vsyncpa [#allocation3], 0  ;;  %s4791_s0 = inlined_call_operand.vmem [shape: f32[2,8,16], index: 0, kind: input, shape index: {}]   ;;  %s4792_s1 = inlined_call_operand.vmem [shape: f32[2,8,16], index: 1, kind: input, shape index: {}]   ;;  %s4793_s2 = inlined_call_operand.vmem [shape: f32[2,16,8], index: 2, kind: input, shape index: {}]   ;;  %s4794_s3 = inlined_call_operand.vmem [shape: f32[2,16,8], index: 3, kind: input, shape index: {}]   ;;  %s4795_s4 = inlined_call_operand.vmem [shape: f32[2,16,8], index: 4, kind: input, shape index: {}]   ;;  %s4796_s5 = inlined_call_operand.hbm [shape: f32[1464,128], index: 5, kind: input, shape index: {}]   ;;  %s4797_s6 = inlined_call_operand.vmem [shape: f32[16,128], index: 6, kind: input, shape index: {}]   ;;  %s4798_s7 = inlined_call_operand.hbm [shape: f32[2,8,128], index: 7, kind: output, shape index: {}]  }
   0x1   :  { %13 = vsyncpa [#allocation4], 0  ;;  %s4183_s24 = smov [#allocation2]  }
   0x2   :  { %s29_s25 = sshll.u32 %s4183_s24, 4  ;;  %s30_s25 = int_to_ptr.vmem [resolvable:$true] %s29_s25 }
   0x3   :  { %s4147_s26 = scalar_lea.vmem %s30_s25, 23424  ;;  %p4152_p1 = scmp.lt.s32.totalorder %s30_s25, %s30_s25 }
   0x4   :  { %p4148_p0 = scmp.ne.s32.totalorder %s30_s25, %s4147_s26  ;;  %p4153_p2 = scmp.lt.s32.totalorder %s4147_s26, %s4147_s26 }
   0x6   :  { %p4154_p3 = por %p4153_p2, %p4152_p1 }
   0x8   :  { %p4155_p4 = pnand %p4154_p3, %p4148_p0 }
   0xa   :  { %4158 = shalt.err (!%p4155_p4)
}
   0xb   :  { %s4184_s27 = smov 128   ;;  %s4185_s28 = smov 8  }
   0xc   :  { %35 = dma.hbm_to_vmem [thread:$0]  %s4796_s5, 23424, %s30_s25, [#allocation3], %s4184_s27, %s4184_s27, %s4185_s28  }
   0xd   :  { %4179 = dma.done.wait [#allocation3], 23424  }
   0xe   :  { %4180 = vsyncadd [#allocation3], 4294943872  ;;  %vm59_vm0 = vcmask 64512   ;;  %v43_v0 = vld [vmem:[%s4791_s0] sm:$0xff]  ;;  %v4246_v2 = vld [vmem:[%s4793_s2 + $0x8] sm:$0xff]  ;;  %vm390_vm1 = vcmask 130048   ;;  %v386_v40 = vlaneseq }
   0xf   :  { %v4241_v1 = vld [vmem:[%s4793_s2] sm:$0xff]  ;;  %3490 = vmatprep.subr.mxu0 %v43_v0  ;;  %v44_v3 = vld [vmem:[%s4791_s0 + $0x8] sm:$0xff]  ;;  %v4256_v4 = vld [vmem:[%s4793_s2 + $0x10] sm:$0xff]  ;;  %vm4187_vm2 = vmmov 0   ;;  %s4188_s12 = smov [#allocation5]  }
  0x10   :  { %3492 = vmatprep.mubr.msk.f32.mxu0 %vm59_vm0, %v4241_v1  ;;  %3491 = vmatpush3.msra.mxu0 %v43_v0  ;;  %v4263_v5 = vld [vmem:[%s4794_s3 + $0x10] sm:$0xff]  ;;  %v4270_v6 = vld [vmem:[%s4793_s2 + $0x18] sm:$0xff]  ;;  %v489_v8 = vld [vmem:[#allocation2 + $0x88] sm:$0xff]  ;;  %v4303_v43 = vshrl.u32 %v386_v40, 7  ;;  %s3101_s13 = sshll.u32 %s4188_s12, 4  ;;  %s3102_s13 = int_to_ptr.vmem [resolvable:$true] %s3101_s13 }
  0x11   :  { %3505 = vmatprep.subr.mxu1 %v44_v3  ;;  %3493 = vmatmul.mubr.msk.f32.vlgmr.msra.gmra.mxu0 %vm59_vm0, %v4246_v2  ;;  %v4275_v7 = vld [vmem:[%s4794_s3 + $0x18] sm:$0xff]  ;;  %v4280_v9 = vld [vmem:[%s4794_s3] sm:$0xff]  ;;  %v385_v10 = vld [vmem:[#allocation2 + $0x8] sm:$0xff]  ;;  %p4164_p6 = scmp.lt.s32.totalorder %s3102_s13, %s3102_s13 }
  0x12   :  { %3495 = vmatprep.subr.mxu0 %v44_v3  ;;  %3497 = vmatprep.mubr.msk.f32.mxu0 %vm59_vm0, %v4256_v4  ;;  %v488_v11 = vld [vmem:[#allocation2 + $0x80] sm:$0xff]  ;;  %v4293_v12 = vld [vmem:[%s4794_s3 + $0x8] sm:$0xff]  ;;  %v487_v14 = vld [vmem:[#allocation2 + $0x78] sm:$0xff]  ;;  %v388_v46 = vsub.s32 0, %v4303_v43 }
  0x13   :  { %3496 = vmatpush3.msra.mxu0 %v44_v3  ;;  %3506 = vmatpush3.msra.mxu1 %v44_v3  ;;  %v384_v13 = vld [vmem:[#allocation2] sm:$0xff]  ;;  %v486_v15 = vld [vmem:[#allocation2 + $0x70] sm:$0xff]  ;;  %v485_v16 = vld [vmem:[#allocation2 + $0x68] sm:$0xff] }
  0x14   :  { %3500 = vmatprep.subr.mxu0 %v43_v0  ;;  %3507 = vmatprep.mubr.msk.f32.mxu1 %vm59_vm0, %v4263_v5  ;;  %v484_v17 = vld [vmem:[#allocation2 + $0x60] sm:$0xff]  ;;  %v483_v18 = vld [vmem:[#allocation2 + $0x58] sm:$0xff]  ;;  %v482_v19 = vld [vmem:[#allocation2 + $0x50] sm:$0xff] }
  0x15   :  { %3517 = vmatprep.subr.mxu1 %v489_v8  ;;  %3498 = vmatmul.mubr.msk.f32.vlgmr.msra.gmra.mxu0 %vm59_vm0, %v4270_v6  ;;  %v481_v20 = vld [vmem:[#allocation2 + $0x48] sm:$0xff]  ;;  %v480_v21 = vld [vmem:[#allocation2 + $0x40] sm:$0xff]  ;;  %v479_v22 = vld [vmem:[#allocation2 + $0x38] sm:$0xff] }
  0x16   :  { %3508 = vmatmul.mubr.msk.f32.vlgmr.msra.gmra.mxu1 %vm59_vm0, %v4275_v7  ;;  %3501 = vmatpush3.msra.mxu0 %v43_v0  ;;  %v478_v23 = vld [vmem:[#allocation2 + $0x30] sm:$0xff]  ;;  %v477_v24 = vld [vmem:[#allocation2 + $0x28] sm:$0xff]  ;;  %v476_v25 = vld [vmem:[#allocation2 + $0x20] sm:$0xff] }
  0x17   :  { %3502 = vmatprep.mubr.msk.f32.mxu0 %vm59_vm0, %v4280_v9  ;;  %3510 = vmatprep.subr.mxu0 %v385_v10  ;;  %v475_v26 = vld [vmem:[#allocation2 + $0x18] sm:$0xff]  ;;  %v474_v27 = vld [vmem:[#allocation2 + $0x10] sm:$0xff]  ;;  %v586_v28 = vld [vmem:[#allocation2 + $0x108] sm:$0xff] }
  0x18   :  { %3518 = vmatpush3.msra.mxu1 %v489_v8  ;;  %v585_v29 = vld [vmem:[#allocation2 + $0x100] sm:$0xff]  ;;  %v584_v30 = vld [vmem:[#allocation2 + $0xf8] sm:$0xff]  ;;  %v583_v31 = vld [vmem:[#allocation2 + $0xf0] sm:$0xff] }
  0x19   :  { %3519 = vmatprep.subr.mxu1 %v488_v11  ;;  %3503 = vmatmul.mubr.msk.f32.vlgmr.msra.gmra.mxu0 %vm59_vm0, %v4293_v12  ;;  %v582_v32 = vld [vmem:[#allocation2 + $0xe8] sm:$0xff]  ;;  %v581_v33 = vld [vmem:[#allocation2 + $0xe0] sm:$0xff]  ;;  %v580_v34 = vld [vmem:[#allocation2 + $0xd8] sm:$0xff] }
  0x1a   :  { %3520 = vmatpush3.msra.mxu1 %v488_v11  ;;  %3511 = vmatpush3.msra.mxu0 %v385_v10  ;;  %v579_v35 = vld [vmem:[#allocation2 + $0xd0] sm:$0xff]  ;;  %v578_v36 = vld [vmem:[#allocation2 + $0xc8] sm:$0xff]  ;;  %v577_v37 = vld [vmem:[#allocation2 + $0xc0] sm:$0xff]  ;;  %v492_v11 = vsub.s32 1, %v4303_v43 }
  0x1b   :  { %3514 = vmatprep.mubr.msk.f32.mxu0 %vm390_vm1, %v43_v0  ;;  %3512 = vmatprep.subr.mxu0 %v384_v13  ;;  %v576_v38 = vld [vmem:[#allocation2 + $0xb8] sm:$0xff]  ;;  %v575_v39 = vld [vmem:[#allocation2 + $0xb0] sm:$0xff]  ;;  %v4313_v47 = vld [vmem:[%s4797_s6] sm:$0xff] }
  0x1c   :  { %3521 = vmatprep.subr.mxu1 %v487_v14  ;;  %3513 = vmatpush3.msra.mxu0 %v384_v13  ;;  %v389_v50 = vrot.slane %v4313_v47, %v388_v46  ;;  %v574_v57 = vld [vmem:[#allocation2 + $0xa8] sm:$0xff]  ;;  %v573_v58 = vld [vmem:[#allocation2 + $0xa0] sm:$0xff]  ;;  %v572_v59 = vld [vmem:[#allocation2 + $0x98] sm:$0xff] }
  0x1d   :  { %3522 = vmatpush3.msra.mxu1 %v487_v14  ;;  %3515 = vmatmul.mubr.msk.f32.vlgmr.msra.gmra.mxu0 %vm390_vm1, %v44_v3  ;;  %v571_v60 = vld [vmem:[#allocation2 + $0x90] sm:$0xff]  ;;  %v671_v61 = vld [vmem:[#allocation2 + $0x128] sm:$0xff]  ;;  %v55_v63 = vld [vmem:[%s4795_s4] sm:$0xff]  ;;  %v493_v14 = vrot.slane %v4313_v47, %v492_v11 }
  0x1e   :  { %3523 = vmatprep.subr.mxu1 %v486_v15  ;;  %3552 = vmatprep.subr.mxu0 %v586_v28  ;;  %v866_v62 = vld [vmem:[#allocation2 + $0x130] sm:$0xff]  ;;  %v56_v0 = vld [vmem:[%s4795_s4 + $0x8] sm:$0xff]  ;;  %v58_v8 = vld [vmem:[%s4795_s4 + $0x18] sm:$0xff] }
  0x1f   :  { %3524 = vmatpush3.msra.mxu1 %v486_v15  ;;  %3553 = vmatpush3.msra.mxu0 %v586_v28  ;;  %v57_v3 = vld [vmem:[%s4795_s4 + $0x10] sm:$0xff] }
  0x20   :  { %3525 = vmatprep.subr.mxu1 %v485_v16  ;;  %3554 = vmatprep.subr.mxu0 %v585_v29  ;;  %v991_v28 = vld [vmem:[#allocation2 + $0x190] sm:$0xff] }
  0x21   :  { %3526 = vmatpush3.msra.mxu1 %v485_v16  ;;  %3555 = vmatpush3.msra.mxu0 %v585_v29  ;;  %v990_v29 = vld [vmem:[#allocation2 + $0x188] sm:$0xff]  ;;  %v1104_v40 = vld [vmem:[#allocation2 + $0x230] sm:$0xff] }
  0x22   :  { %3527 = vmatprep.subr.mxu1 %v484_v17  ;;  %3556 = vmatprep.subr.mxu0 %v584_v30 }
  0x23   :  { %3528 = vmatpush3.msra.mxu1 %v484_v17  ;;  %3557 = vmatpush3.msra.mxu0 %v584_v30  ;;  %v989_v30 = vld [vmem:[#allocation2 + $0x180] sm:$0xff] }
  0x24   :  { %3529 = vmatprep.subr.mxu1 %v483_v18  ;;  %3558 = vmatprep.subr.mxu0 %v583_v31 }
  0x25   :  { %3530 = vmatpush3.msra.mxu1 %v483_v18  ;;  %3559 = vmatpush3.msra.mxu0 %v583_v31  ;;  %v988_v31 = vld [vmem:[#allocation2 + $0x178] sm:$0xff] }
  0x26   :  { %3531 = vmatprep.subr.mxu1 %v482_v19  ;;  %3560 = vmatprep.subr.mxu0 %v582_v32 }
  0x27   :  { %3532 = vmatpush3.msra.mxu1 %v482_v19  ;;  %3561 = vmatpush3.msra.mxu0 %v582_v32  ;;  %v987_v32 = vld [vmem:[#allocation2 + $0x170] sm:$0xff] }
  0x28   :  { %3533 = vmatprep.subr.mxu1 %v481_v20  ;;  %3562 = vmatprep.subr.mxu0 %v581_v33 }
  0x29   :  { %3534 = vmatpush3.msra.mxu1 %v481_v20  ;;  %3563 = vmatpush3.msra.mxu0 %v581_v33  ;;  %v986_v33 = vld [vmem:[#allocation2 + $0x168] sm:$0xff] }
  0x2a   :  { %3535 = vmatprep.subr.mxu1 %v480_v21  ;;  %3564 = vmatprep.subr.mxu0 %v580_v34 }
  0x2b   :  { %3536 = vmatpush3.msra.mxu1 %v480_v21  ;;  %3565 = vmatpush3.msra.mxu0 %v580_v34  ;;  %v670_v21 = vld [vmem:[#allocation2 + $0x120] sm:$0xff] }
  0x2c   :  { %3537 = vmatprep.subr.mxu1 %v479_v22  ;;  %3566 = vmatprep.subr.mxu0 %v579_v35  ;;  %v985_v34 = vld [vmem:[#allocation2 + $0x160] sm:$0xff] }
  0x2d   :  { %3538 = vmatpush3.msra.mxu1 %v479_v22  ;;  %3567 = vmatpush3.msra.mxu0 %v579_v35  ;;  %v669_v22 = vld [vmem:[#allocation2 + $0x118] sm:$0xff] }
  0x2e   :  { %3539 = vmatprep.subr.mxu1 %v478_v23  ;;  %3568 = vmatprep.subr.mxu0 %v578_v36  ;;  %v984_v35 = vld [vmem:[#allocation2 + $0x158] sm:$0xff] }
  0x2f   :  { %3540 = vmatpush3.msra.mxu1 %v478_v23  ;;  %3569 = vmatpush3.msra.mxu0 %v578_v36  ;;  %v668_v23 = vld [vmem:[#allocation2 + $0x110] sm:$0xff] }
  0x30   :  { %3541 = vmatprep.subr.mxu1 %v477_v24  ;;  %3570 = vmatprep.subr.mxu0 %v577_v37  ;;  %v983_v36 = vld [vmem:[#allocation2 + $0x150] sm:$0xff] }
  0x31   :  { %3542 = vmatpush3.msra.mxu1 %v477_v24  ;;  %3571 = vmatpush3.msra.mxu0 %v577_v37  ;;  %v995_v24 = vld [vmem:[#allocation2 + $0x1b0] sm:$0xff]  ;;  %v982_v37 = vld [vmem:[#allocation2 + $0x148] sm:$0xff] }
  0x32   :  { %3543 = vmatprep.subr.mxu1 %v476_v25  ;;  %3572 = vmatprep.subr.mxu0 %v576_v38 }
  0x33   :  { %3544 = vmatpush3.msra.mxu1 %v476_v25  ;;  %3573 = vmatpush3.msra.mxu0 %v576_v38  ;;  %v994_v25 = vld [vmem:[#allocation2 + $0x1a8] sm:$0xff]  ;;  %v981_v38 = vld [vmem:[#allocation2 + $0x140] sm:$0xff] }
  0x34   :  { %3545 = vmatprep.subr.mxu1 %v475_v26  ;;  %3574 = vmatprep.subr.mxu0 %v575_v39 }
  0x35   :  { %3546 = vmatpush3.msra.mxu1 %v475_v26  ;;  %3575 = vmatpush3.msra.mxu0 %v575_v39  ;;  %v993_v26 = vld [vmem:[#allocation2 + $0x1a0] sm:$0xff]  ;;  %v980_v39 = vld [vmem:[#allocation2 + $0x138] sm:$0xff] }
  0x36   :  { %3547 = vmatprep.subr.mxu1 %v474_v27  ;;  %3576 = vmatprep.subr.mxu0 %v574_v57 }
  0x37   :  { %3548 = vmatpush3.msra.mxu1 %v474_v27  ;;  %3577 = vmatpush3.msra.mxu0 %v574_v57  ;;  %v992_v27 = vld [vmem:[#allocation2 + $0x198] sm:$0xff] }
  0x38   :  { %3578 = vmatprep.subr.mxu0 %v573_v58  ;;  %3607 = vmatprep.subr.mxu1 %v866_v62 }
  0x39   :  { %3579 = vmatpush3.msra.mxu0 %v573_v58 }
  0x3a   :  { %3580 = vmatprep.subr.mxu0 %v572_v59 }
  0x3b   :  { %3581 = vmatpush3.msra.mxu0 %v572_v59 }
  0x3c   :  { %3582 = vmatprep.subr.mxu0 %v571_v60 }
  0x3d   :  { %3583 = vmatpush3.msra.mxu0 %v571_v60 }
  0x3e   :  { %3587 = vmatprep.subr.mxu0 %v671_v61 }
  0xd1   :  { %v4299_v41 = vpop.f32.mrf.mxu0 }
  0xd3   :  { %v4301_v42 = vpop.f32.mrf.mxu0 }
  0xd5   :  { %v4305_v44 = vpop.f32.mrf.mxu0 }
  0xd6   :  { %v3509_v10 = vpop.f32.mrf.mxu1 }
  0xd7   :  { %v4307_v45 = vpop.f32.mrf.mxu0 }
  0xd8   :  { %v375_v13 = vpop.f32.mrf.mxu1 }
  0xd9   :  { %v3504_v48 = vpop.f32.mrf.mxu0 }
  0xdb   :  { %v294_v49 = vpop.f32.mrf.mxu0 }
  0xdd   :  { %v3516_v51 = vpop.f32.mrf.mxu0 }
  0xde   :  { %v469_v52 = vadd.f32 %v3516_v51, %v389_v50  ;;  %v1096_v51 = vld [vmem:[#allocation2 + $0x1f0] sm:$0xff] }
  0xdf   :  { %v463_v53 = vpop.f32.mrf.mxu0 }
  0xe0   :  { %v464_v54 = vadd.f32 %v463_v53, %v389_v50  ;;  %v473_v56 = vmax.f32 %v469_v52, 0.0  ;;  %v1097_v50 = vld [vmem:[#allocation2 + $0x1f8] sm:$0xff]  ;;  %v1095_v52 = vld [vmem:[#allocation2 + $0x1e8] sm:$0xff]  ;;  %v1094_v53 = vld [vmem:[#allocation2 + $0x1e0] sm:$0xff] }
  0xe2   :  { %v472_v55 = vmax.f32 %v464_v54, 0.0  ;;  %v1093_v54 = vld [vmem:[#allocation2 + $0x1d8] sm:$0xff] }
  0xe4   :  { %3549 = vmatprep.mubr.f32.mxu1 %v472_v55  ;;  %v1092_v55 = vld [vmem:[#allocation2 + $0x1d0] sm:$0xff] }
  0xe5   :  { %3550 = vmatmul.mubr.f32.vlgmr.msra.gmra.mxu1 %v473_v56 }
  0xe6   :  { %3609 = vmatprep.mubr.msk.f32.mxu1 %vm59_vm0, %v55_v63  ;;  %3608 = vmatpush3.msra.mxu1 %v866_v62  ;;  %v970_v63 = vsub.s32 3, %v4303_v43 }
  0xe7   :  { %3653 = vmatprep.subr.mxu1 %v1104_v40 }
  0xe9   :  { %3610 = vmatmul.mubr.msk.f32.vlgmr.msra.gmra.mxu1 %vm59_vm0, %v56_v0 }
  0xea   :  { %3612 = vmatprep.mubr.msk.f32.mxu1 %vm59_vm0, %v57_v3  ;;  %3654 = vmatpush3.msra.mxu1 %v1104_v40  ;;  %v1210_v40 = vld [vmem:[#allocation2 + $0x298] sm:$0xff] }
  0xed   :  { %3613 = vmatmul.mubr.msk.f32.gmra.mxu1 %vm59_vm0, %v58_v8 }
 0x1a5   :  { %v3551_v15 = vpop.f32.mrf.mxu1 }
 0x1a6   :  { %v566_v16 = vadd.f32 %v3551_v15, %v493_v14 }
 0x1a7   :  { %v560_v17 = vpop.f32.mrf.mxu1 }
 0x1a8   :  { %v561_v18 = vadd.f32 %v560_v17, %v493_v14  ;;  %v570_v20 = vmax.f32 %v566_v16, 0.0 }
 0x1aa   :  { %v569_v19 = vmax.f32 %v561_v18, 0.0 }
 0x1ac   :  { %3584 = vmatprep.mubr.f32.mxu0 %v569_v19 }
 0x1ad   :  { %3585 = vmatmul.mubr.f32.vlgmr.msra.gmra.mxu0 %v570_v20 }
 0x1ae   :  { %3588 = vmatpush3.msra.mxu0 %v671_v61  ;;  %3591 = vmatprep.mubr.msk.f32.mxu0 %vm390_vm1, %v294_v49  ;;  %v1098_v49 = vld [vmem:[#allocation2 + $0x200] sm:$0xff]  ;;  %v3611_v61 = vpop.f32.mrf.mxu1 }
 0x1af   :  { %3589 = vmatprep.subr.mxu0 %v670_v21 }
 0x1b0   :  { %3590 = vmatpush3.msra.mxu0 %v670_v21  ;;  %v945_v3 = vpop.f32.mrf.mxu1 }
 0x1b1   :  { %3592 = vmatmul.mubr.msk.f32.vlgmr.msra.gmra.mxu0 %vm390_vm1, %v3504_v48  ;;  %3597 = vmatprep.subr.mxu0 %v669_v22  ;;  %v1099_v48 = vld [vmem:[#allocation2 + $0x208] sm:$0xff] }
 0x1b2   :  { %3594 = vmatprep.mubr.msk.f32.mxu0 %vm390_vm1, %v375_v13  ;;  %3598 = vmatpush3.msra.mxu0 %v669_v22  ;;  %v3614_v17 = vpop.f32.mrf.mxu1 }
 0x1b3   :  { %3599 = vmatprep.subr.mxu0 %v668_v23 }
 0x1b4   :  { %3600 = vmatpush3.msra.mxu0 %v668_v23 }
 0x1b5   :  { %3595 = vmatmul.mubr.msk.f32.gmra.mxu0 %vm390_vm1, %v3509_v10  ;;  %3615 = vmatprep.subr.mxu0 %v995_v24  ;;  %v971_v10 = vrot.slane %v4313_v47, %v970_v63 }
 0x1b6   :  { %3601 = vmatprep.mubr.msk.f32.mxu0 %vm390_vm1, %v4301_v42  ;;  %v1102_v42 = vld [vmem:[#allocation2 + $0x220] sm:$0xff] }
 0x1b9   :  { %3602 = vmatmul.mubr.msk.f32.vlgmr.msra.gmra.mxu0 %vm390_vm1, %v4299_v41  ;;  %v1103_v41 = vld [vmem:[#allocation2 + $0x228] sm:$0xff] }
 0x1ba   :  { %3604 = vmatprep.mubr.msk.f32.mxu0 %vm390_vm1, %v4307_v45  ;;  %3616 = vmatpush3.msra.mxu0 %v995_v24  ;;  %v1100_v45 = vld [vmem:[#allocation2 + $0x210] sm:$0xff] }
 0x1bb   :  { %3617 = vmatprep.subr.mxu0 %v994_v25  ;;  %3655 = vmatprep.subr.mxu1 %v1103_v41 }
 0x1bc   :  { %3618 = vmatpush3.msra.mxu0 %v994_v25  ;;  %3656 = vmatpush3.msra.mxu1 %v1103_v41  ;;  %v955_v25 = vpop.f32.mrf.mxu1  ;;  %v1209_v41 = vld [vmem:[#allocation2 + $0x290] sm:$0xff] }
 0x1bd   :  { %3605 = vmatmul.mubr.msk.f32.gmra.mxu0 %vm390_vm1, %v4305_v44  ;;  %3619 = vmatprep.subr.mxu0 %v993_v26  ;;  %v1101_v44 = vld [vmem:[#allocation2 + $0x218] sm:$0xff] }
 0x1be   :  { %3620 = vmatpush3.msra.mxu0 %v993_v26  ;;  %3657 = vmatprep.subr.mxu1 %v1102_v42 }
 0x1bf   :  { %3621 = vmatprep.subr.mxu0 %v992_v27  ;;  %3658 = vmatpush3.msra.mxu1 %v1102_v42  ;;  %v1208_v42 = vld [vmem:[#allocation2 + $0x288] sm:$0xff] }
 0x1c0   :  { %3622 = vmatpush3.msra.mxu0 %v992_v27  ;;  %3659 = vmatprep.subr.mxu1 %v1101_v44 }
 0x1c1   :  { %3623 = vmatprep.subr.mxu0 %v991_v28  ;;  %3660 = vmatpush3.msra.mxu1 %v1101_v44  ;;  %v1207_v44 = vld [vmem:[#allocation2 + $0x280] sm:$0xff] }
 0x1c2   :  { %3624 = vmatpush3.msra.mxu0 %v991_v28  ;;  %3661 = vmatprep.subr.mxu1 %v1100_v45 }
 0x1c3   :  { %3625 = vmatprep.subr.mxu0 %v990_v29  ;;  %3662 = vmatpush3.msra.mxu1 %v1100_v45  ;;  %v1206_v45 = vld [vmem:[#allocation2 + $0x278] sm:$0xff] }
 0x1c4   :  { %3626 = vmatpush3.msra.mxu0 %v990_v29  ;;  %3663 = vmatprep.subr.mxu1 %v1099_v48 }
 0x1c5   :  { %3627 = vmatprep.subr.mxu0 %v989_v30  ;;  %3664 = vmatpush3.msra.mxu1 %v1099_v48  ;;  %v1205_v48 = vld [vmem:[#allocation2 + $0x270] sm:$0xff] }
 0x1c6   :  { %3628 = vmatpush3.msra.mxu0 %v989_v30  ;;  %3665 = vmatprep.subr.mxu1 %v1098_v49 }
 0x1c7   :  { %3629 = vmatprep.subr.mxu0 %v988_v31  ;;  %3666 = vmatpush3.msra.mxu1 %v1098_v49  ;;  %v1204_v49 = vld [vmem:[#allocation2 + $0x268] sm:$0xff] }
 0x1c8   :  { %3630 = vmatpush3.msra.mxu0 %v988_v31  ;;  %3667 = vmatprep.subr.mxu1 %v1097_v50 }
 0x1c9   :  { %3631 = vmatprep.subr.mxu0 %v987_v32  ;;  %3668 = vmatpush3.msra.mxu1 %v1097_v50  ;;  %v1203_v50 = vld [vmem:[#allocation2 + $0x260] sm:$0xff] }
 0x1ca   :  { %3632 = vmatpush3.msra.mxu0 %v987_v32  ;;  %3669 = vmatprep.subr.mxu1 %v1096_v51 }
 0x1cb   :  { %3633 = vmatprep.subr.mxu0 %v986_v33  ;;  %3670 = vmatpush3.msra.mxu1 %v1096_v51  ;;  %v1202_v51 = vld [vmem:[#allocation2 + $0x258] sm:$0xff] }
 0x1cc   :  { %3634 = vmatpush3.msra.mxu0 %v986_v33  ;;  %3671 = vmatprep.subr.mxu1 %v1095_v52  ;;  %v1091_v33 = vld [vmem:[#allocation2 + $0x1c8] sm:$0xff] }
 0x1cd   :  { %3635 = vmatprep.subr.mxu0 %v985_v34  ;;  %3672 = vmatpush3.msra.mxu1 %v1095_v52  ;;  %v998_v52 = vsub.s32 4, %v4303_v43 }
 0x1ce   :  { %3636 = vmatpush3.msra.mxu0 %v985_v34  ;;  %3673 = vmatprep.subr.mxu1 %v1094_v53  ;;  %v1090_v34 = vld [vmem:[#allocation2 + $0x1c0] sm:$0xff] }
 0x1cf   :  { %3637 = vmatprep.subr.mxu0 %v984_v35  ;;  %3674 = vmatpush3.msra.mxu1 %v1094_v53  ;;  %v999_v53 = vrot.slane %v4313_v47, %v998_v52 }
 0x1d0   :  { %3638 = vmatpush3.msra.mxu0 %v984_v35  ;;  %3675 = vmatprep.subr.mxu1 %v1093_v54  ;;  %v1089_v35 = vld [vmem:[#allocation2 + $0x1b8] sm:$0xff] }
 0x1d1   :  { %3639 = vmatprep.subr.mxu0 %v983_v36  ;;  %3676 = vmatpush3.msra.mxu1 %v1093_v54 }
 0x1d2   :  { %3640 = vmatpush3.msra.mxu0 %v983_v36  ;;  %3677 = vmatprep.subr.mxu1 %v1092_v55  ;;  %v1318_v36 = vld [vmem:[#allocation2 + $0x430] sm:$0xff] }
 0x1d3   :  { %3641 = vmatprep.subr.mxu0 %v982_v37  ;;  %3678 = vmatpush3.msra.mxu1 %v1092_v55  ;;  %v589_v55 = vsub.s32 2, %v4303_v43 }
 0x1d4   :  { %3642 = vmatpush3.msra.mxu0 %v982_v37  ;;  %3679 = vmatprep.subr.mxu1 %v1091_v33  ;;  %v1213_v37 = vld [vmem:[#allocation2 + $0x2b0] sm:$0xff] }
 0x1d5   :  { %3643 = vmatprep.subr.mxu0 %v981_v38  ;;  %3680 = vmatpush3.msra.mxu1 %v1091_v33  ;;  %v1201_v33 = vld [vmem:[#allocation2 + $0x250] sm:$0xff] }
 0x1d6   :  { %3644 = vmatpush3.msra.mxu0 %v981_v38  ;;  %3681 = vmatprep.subr.mxu1 %v1090_v34  ;;  %v1212_v38 = vld [vmem:[#allocation2 + $0x2a8] sm:$0xff] }
 0x1d7   :  { %3645 = vmatprep.subr.mxu0 %v980_v39  ;;  %3682 = vmatpush3.msra.mxu1 %v1090_v34  ;;  %v1200_v34 = vld [vmem:[#allocation2 + $0x248] sm:$0xff] }
 0x1d8   :  { %3646 = vmatpush3.msra.mxu0 %v980_v39  ;;  %3683 = vmatprep.subr.mxu1 %v1089_v35  ;;  %v1211_v39 = vld [vmem:[#allocation2 + $0x2a0] sm:$0xff] }
 0x1d9   :  { %3684 = vmatpush3.msra.mxu1 %v1089_v35  ;;  %3691 = vmatprep.subr.mxu0 %v1213_v37  ;;  %v1199_v35 = vld [vmem:[#allocation2 + $0x240] sm:$0xff] }
 0x1da   :  { %3729 = vmatprep.subr.mxu1 %v1318_v36 }
 0x26d   :  { %v4350_v56 = vpop.f32.mrf.mxu0 }
 0x26f   :  { %v4352_v57 = vpop.f32.mrf.mxu0 }
 0x271   :  { %v3593_v58 = vpop.f32.mrf.mxu0 }
 0x273   :  { %v750_v59 = vpop.f32.mrf.mxu0 }
 0x275   :  { %v3596_v60 = vpop.f32.mrf.mxu0 }
 0x277   :  { %v760_v62 = vpop.f32.mrf.mxu0 }
 0x279   :  { %v3603_v0 = vpop.f32.mrf.mxu0 }
 0x27a   :  { %v853_v8 = vadd.f32 %v3603_v0, %v3593_v58 }
 0x27b   :  { %v847_v13 = vpop.f32.mrf.mxu0 }
 0x27c   :  { %v965_v14 = vadd.f32 %v3611_v61, %v853_v8  ;;  %v848_v15 = vadd.f32 %v847_v13, %v750_v59 }
 0x27d   :  { %v3606_v16 = vpop.f32.mrf.mxu0 }
 0x27e   :  { %v964_v18 = vadd.f32 %v945_v3, %v848_v15  ;;  %v863_v19 = vadd.f32 %v3606_v16, %v3596_v60  ;;  %v973_v20 = vadd.f32 %v971_v10, %v965_v14  ;;  %v1317_v14 = vld [vmem:[#allocation2 + $0x428] sm:$0xff]  ;;  %v1316_v16 = vld [vmem:[#allocation2 + $0x420] sm:$0xff] }
 0x27f   :  { %v857_v21 = vpop.f32.mrf.mxu0 }
 0x280   :  { %v972_v22 = vadd.f32 %v971_v10, %v964_v18  ;;  %v967_v23 = vadd.f32 %v3614_v17, %v863_v19  ;;  %v858_v24 = vadd.f32 %v857_v21, %v760_v62  ;;  %v977_v28 = vmax.f32 %v973_v20, 0.0  ;;  %v1315_v19 = vld [vmem:[#allocation2 + $0x418] sm:$0xff]  ;;  %v1314_v20 = vld [vmem:[#allocation2 + $0x410] sm:$0xff]  ;;  %v1312_v21 = vld [vmem:[#allocation2 + $0x400] sm:$0xff] }
 0x281   :  { %v590_v62 = vrot.slane %v4313_v47, %v589_v55 }
 0x282   :  { %v976_v26 = vmax.f32 %v972_v22, 0.0  ;;  %v966_v27 = vadd.f32 %v955_v25, %v858_v24  ;;  %v975_v29 = vadd.f32 %v971_v10, %v967_v23  ;;  %v1311_v22 = vld [vmem:[#allocation2 + $0x3f8] sm:$0xff]  ;;  %v1310_v23 = vld [vmem:[#allocation2 + $0x3f0] sm:$0xff]  ;;  %v1309_v24 = vld [vmem:[#allocation2 + $0x3e8] sm:$0xff] }
 0x283   :  { %v1308_v25 = vld [vmem:[#allocation2 + $0x3e0] sm:$0xff] }
 0x284   :  { %v974_v30 = vadd.f32 %v971_v10, %v966_v27  ;;  %3647 = vmatprep.mubr.f32.mxu0 %v976_v26  ;;  %v979_v32 = vmax.f32 %v975_v29, 0.0  ;;  %v658_v10 = vadd.f32 %v4352_v57, %v590_v62  ;;  %v1313_v57 = vld [vmem:[#allocation2 + $0x408] sm:$0xff]  ;;  %v1307_v26 = vld [vmem:[#allocation2 + $0x3d8] sm:$0xff]  ;;  %v1306_v27 = vld [vmem:[#allocation2 + $0x3d0] sm:$0xff] }
 0x285   :  { %3648 = vmatmul.mubr.f32.vlgmr.msra.gmra.mxu0 %v977_v28  ;;  %v1305_v28 = vld [vmem:[#allocation2 + $0x3c8] sm:$0xff]  ;;  %v1304_v29 = vld [vmem:[#allocation2 + $0x3c0] sm:$0xff] }
 0x286   :  { %v978_v31 = vmax.f32 %v974_v30, 0.0  ;;  %3692 = vmatpush3.msra.mxu0 %v1213_v37  ;;  %v666_v18 = vmax.f32 %v658_v10, 0.0  ;;  %v663_v30 = vadd.f32 %v4350_v56, %v590_v62  ;;  %v1198_v56 = vld [vmem:[#allocation2 + $0x238] sm:$0xff]  ;;  %v4377_v37 = vld [vmem:[#allocation2 + $0x3a8] sm:$0xff]  ;;  %v4442_v62 = vld [vmem:[#allocation2 + $0x300] sm:$0xff] }
 0x287   :  { %3693 = vmatprep.subr.mxu0 %v1212_v38  ;;  %v4462_v10 = vld [vmem:[#allocation2 + $0x370] sm:$0xff] }
 0x288   :  { %3650 = vmatprep.mubr.f32.mxu0 %v978_v31  ;;  %3694 = vmatpush3.msra.mxu0 %v1212_v38  ;;  %v1303_v31 = vld [vmem:[#allocation2 + $0x3b8] sm:$0xff]  ;;  %v4381_v38 = vld [vmem:[#allocation2 + $0x3a0] sm:$0xff] }
 0x289   :  { %3651 = vmatmul.mubr.f32.gmra.mxu0 %v979_v32  ;;  %3695 = vmatprep.subr.mxu0 %v1211_v39  ;;  %v667_v32 = vmax.f32 %v663_v30, 0.0 }
 0x28a   :  { %3696 = vmatpush3.msra.mxu0 %v1211_v39  ;;  %v4397_v39 = vld [vmem:[#allocation2 + $0x380] sm:$0xff] }
 0x28b   :  { %3697 = vmatprep.subr.mxu0 %v1210_v40 }
 0x28c   :  { %3698 = vmatpush3.msra.mxu0 %v1210_v40  ;;  %v4401_v40 = vld [vmem:[#allocation2 + $0x378] sm:$0xff] }
 0x28d   :  { %3699 = vmatprep.subr.mxu0 %v1209_v41 }
 0x28e   :  { %3700 = vmatpush3.msra.mxu0 %v1209_v41  ;;  %v1107_v41 = vsub.s32 5, %v4303_v43 }
 0x28f   :  { %3701 = vmatprep.subr.mxu0 %v1208_v42 }
 0x290   :  { %3702 = vmatpush3.msra.mxu0 %v1208_v42  ;;  %v1108_v42 = vrot.slane %v4313_v47, %v1107_v41 }
 0x291   :  { %3703 = vmatprep.subr.mxu0 %v1207_v44 }
 0x292   :  { %3704 = vmatpush3.msra.mxu0 %v1207_v44 }
 0x293   :  { %3705 = vmatprep.subr.mxu0 %v1206_v45 }
 0x294   :  { %3706 = vmatpush3.msra.mxu0 %v1206_v45 }
 0x295   :  { %3707 = vmatprep.subr.mxu0 %v1205_v48 }
 0x296   :  { %3708 = vmatpush3.msra.mxu0 %v1205_v48 }
 0x297   :  { %3709 = vmatprep.subr.mxu0 %v1204_v49 }
 0x298   :  { %3710 = vmatpush3.msra.mxu0 %v1204_v49 }
 0x299   :  { %3711 = vmatprep.subr.mxu0 %v1203_v50 }
 0x29a   :  { %3712 = vmatpush3.msra.mxu0 %v1203_v50 }
 0x29b   :  { %3713 = vmatprep.subr.mxu0 %v1202_v51 }
 0x29c   :  { %3714 = vmatpush3.msra.mxu0 %v1202_v51 }
 0x29d   :  { %3715 = vmatprep.subr.mxu0 %v1201_v33 }
 0x29e   :  { %3716 = vmatpush3.msra.mxu0 %v1201_v33 }
 0x29f   :  { %3717 = vmatprep.subr.mxu0 %v1200_v34 }
 0x2a0   :  { %3718 = vmatpush3.msra.mxu0 %v1200_v34 }
 0x2a1   :  { %3719 = vmatprep.subr.mxu0 %v1199_v35 }
 0x2a2   :  { %3720 = vmatpush3.msra.mxu0 %v1199_v35 }
 0x2a3   :  { %3721 = vmatprep.subr.mxu0 %v1198_v56 }
 0x2a4   :  { %3722 = vmatpush3.msra.mxu0 %v1198_v56 }
 0x345   :  { %v3649_v54 = vpop.f32.mrf.mxu0 }
 0x346   :  { %v1072_v58 = vadd.f32 %v3649_v54, %v999_v53 }
 0x347   :  { %v1066_v59 = vpop.f32.mrf.mxu0 }
 0x348   :  { %v1067_v60 = vadd.f32 %v1066_v59, %v999_v53  ;;  %v1086_v0 = vmax.f32 %v1072_v58, 0.0 }
 0x349   :  { %v3652_v61 = vpop.f32.mrf.mxu0 }
 0x34a   :  { %v1085_v63 = vmax.f32 %v1067_v60, 0.0  ;;  %v1082_v3 = vadd.f32 %v3652_v61, %v999_v53  ;;  %v4413_v60 = vld [vmem:[#allocation2 + $0x330] sm:$0xff]  ;;  %v4421_v61 = vld [vmem:[#allocation2 + $0x328] sm:$0xff] }
 0x34b   :  { %v1076_v8 = vpop.f32.mrf.mxu0 }
 0x34c   :  { %v1077_v13 = vadd.f32 %v1076_v8, %v999_v53  ;;  %3685 = vmatprep.mubr.f32.mxu1 %v1085_v63  ;;  %v1088_v17 = vmax.f32 %v1082_v3, 0.0  ;;  %v4446_v63 = vld [vmem:[#allocation2 + $0x2f8] sm:$0xff]  ;;  %v4454_v3 = vld [vmem:[#allocation2 + $0x2e8] sm:$0xff]  ;;  %v4460_v8 = vld [vmem:[#allocation2 + $0x2e0] sm:$0xff] }
 0x34d   :  { %3686 = vmatmul.mubr.f32.vlgmr.msra.gmra.mxu1 %v1086_v0  ;;  %v4450_v0 = vld [vmem:[#allocation2 + $0x2f0] sm:$0xff] }
 0x34e   :  { %v1087_v15 = vmax.f32 %v1077_v13, 0.0  ;;  %3730 = vmatpush3.msra.mxu1 %v1318_v36  ;;  %v4186_v36 = vmov 0.0   ;;  %v4468_v13 = vld [vmem:[#allocation2 + $0x2d8] sm:$0xff] }
 0x34f   :  { %3731 = vmatprep.subr.mxu1 %v1317_v14  ;;  %3764 = vmatprep.subr.mxu0 %v4186_v36 }
 0x350   :  { %3732 = vmatpush3.msra.mxu1 %v1317_v14  ;;  %3688 = vmatprep.mubr.f32.mxu1 %v1087_v15  ;;  %v4470_v14 = vld [vmem:[#allocation2 + $0x368] sm:$0xff]  ;;  %v4476_v15 = vld [vmem:[#allocation2 + $0x2d0] sm:$0xff] }
 0x351   :  { %3733 = vmatprep.subr.mxu1 %v1316_v16  ;;  %3689 = vmatmul.mubr.f32.gmra.mxu1 %v1088_v17  ;;  %v4484_v17 = vld [vmem:[#allocation2 + $0x2c8] sm:$0xff] }
 0x352   :  { %3734 = vmatpush3.msra.mxu1 %v1316_v16  ;;  %3761 = vmatprep.mubr.f32.mxu1 %v666_v18  ;;  %v4478_v16 = vld [vmem:[#allocation2 + $0x360] sm:$0xff]  ;;  %v4486_v18 = vld [vmem:[#allocation2 + $0x358] sm:$0xff] }
 0x353   :  { %3735 = vmatprep.subr.mxu1 %v1315_v19 }
 0x354   :  { %3736 = vmatpush3.msra.mxu1 %v1315_v19  ;;  %v4492_v19 = vld [vmem:[#allocation2 + $0x2c0] sm:$0xff] }
 0x355   :  { %3737 = vmatprep.subr.mxu1 %v1314_v20 }
 0x356   :  { %3738 = vmatpush3.msra.mxu1 %v1314_v20  ;;  %v4494_v20 = vld [vmem:[#allocation2 + $0x350] sm:$0xff] }
 0x357   :  { %3739 = vmatprep.subr.mxu1 %v1313_v57 }
 0x358   :  { %3740 = vmatpush3.msra.mxu1 %v1313_v57  ;;  %v4500_v57 = vld [vmem:[#allocation2 + $0x2b8] sm:$0xff] }
 0x359   :  { %3741 = vmatprep.subr.mxu1 %v1312_v21 }
 0x35a   :  { %3742 = vmatpush3.msra.mxu1 %v1312_v21  ;;  %v4502_v21 = vld [vmem:[#allocation2 + $0x348] sm:$0xff] }
 0x35b   :  { %3743 = vmatprep.subr.mxu1 %v1311_v22 }
 0x35c   :  { %3744 = vmatpush3.msra.mxu1 %v1311_v22  ;;  %v4508_v22 = vld [vmem:[#allocation2 + $0x340] sm:$0xff] }
 0x35d   :  { %3745 = vmatprep.subr.mxu1 %v1310_v23 }
 0x35e   :  { %3746 = vmatpush3.msra.mxu1 %v1310_v23  ;;  %v4513_v23 = vld [vmem:[#allocation2 + $0x338] sm:$0xff] }
 0x35f   :  { %3747 = vmatprep.subr.mxu1 %v1309_v24 }
 0x360   :  { %3748 = vmatpush3.msra.mxu1 %v1309_v24 }
 0x361   :  { %3749 = vmatprep.subr.mxu1 %v1308_v25 }
 0x362   :  { %3750 = vmatpush3.msra.mxu1 %v1308_v25 }
 0x363   :  { %3751 = vmatprep.subr.mxu1 %v1307_v26 }
 0x364   :  { %3752 = vmatpush3.msra.mxu1 %v1307_v26 }
 0x365   :  { %3753 = vmatprep.subr.mxu1 %v1306_v27 }
 0x366   :  { %3754 = vmatpush3.msra.mxu1 %v1306_v27 }
 0x367   :  { %3755 = vmatprep.subr.mxu1 %v1305_v28 }
 0x368   :  { %3756 = vmatpush3.msra.mxu1 %v1305_v28 }
 0x369   :  { %3757 = vmatprep.subr.mxu1 %v1304_v29 }
 0x36a   :  { %3758 = vmatpush3.msra.mxu1 %v1304_v29 }
 0x36b   :  { %3759 = vmatprep.subr.mxu1 %v1303_v31 }
 0x36c   :  { %3760 = vmatpush3.msra.mxu1 %v1303_v31 }
 0x36d   :  { %3762 = vmatmul.mubr.f32.vlgmr.msra.gmra.mxu1 %v667_v32  ;;  %3769 = vmatprep.subr.mxu1 %v4186_v36 }
 0x36e   :  { %3771 = vmatprep.mubr.msk.f32.mxu1 %vm59_vm0, %v4256_v4  ;;  %3770 = vmatpush3.msra.mxu1 %v4186_v36  ;;  %v4375_v4 = vld [vmem:[#allocation2 + $0x3b0] sm:$0xff] }
 0x36f   :  { %3779 = vmatprep.subr.mxu1 %v4186_v36 }
 0x371   :  { %3772 = vmatmul.mubr.msk.f32.vlgmr.msra.gmra.mxu1 %vm59_vm0, %v4270_v6  ;;  %v4385_v6 = vld [vmem:[#allocation2 + $0x398] sm:$0xff] }
 0x372   :  { %3780 = vmatpush3.msra.mxu1 %v4186_v36  ;;  %3781 = vmatprep.mubr.msk.f32.mxu1 %vm59_vm0, %v4263_v5  ;;  %v4389_v5 = vld [vmem:[#allocation2 + $0x390] sm:$0xff] }
 0x373   :  { %3822 = vmatprep.subr.mxu1 %v4375_v4 }
 0x375   :  { %3782 = vmatmul.mubr.msk.f32.vlgmr.msra.gmra.mxu1 %vm59_vm0, %v4275_v7  ;;  %v4393_v7 = vld [vmem:[#allocation2 + $0x388] sm:$0xff] }
 0x376   :  { %3823 = vmatpush3.msra.mxu1 %v4375_v4 }
 0x377   :  { %3824 = vmatprep.subr.mxu1 %v4377_v37 }
 0x378   :  { %3825 = vmatpush3.msra.mxu1 %v4377_v37 }
 0x379   :  { %3826 = vmatprep.subr.mxu1 %v4381_v38 }
 0x37a   :  { %3827 = vmatpush3.msra.mxu1 %v4381_v38 }
 0x37b   :  { %3828 = vmatprep.subr.mxu1 %v4385_v6 }
 0x37c   :  { %3829 = vmatpush3.msra.mxu1 %v4385_v6 }
 0x37d   :  { %3830 = vmatprep.subr.mxu1 %v4389_v5 }
 0x37e   :  { %3831 = vmatpush3.msra.mxu1 %v4389_v5 }
 0x37f   :  { %3832 = vmatprep.subr.mxu1 %v4393_v7 }
 0x380   :  { %3833 = vmatpush3.msra.mxu1 %v4393_v7 }
 0x381   :  { %3834 = vmatprep.subr.mxu1 %v4397_v39 }
 0x382   :  { %3835 = vmatpush3.msra.mxu1 %v4397_v39 }
 0x383   :  { %3836 = vmatprep.subr.mxu1 %v4401_v40 }
 0x384   :  { %3837 = vmatpush3.msra.mxu1 %v4401_v40 }
 0x385   :  { %3838 = vmatprep.subr.mxu1 %v4462_v10 }
 0x386   :  { %3839 = vmatpush3.msra.mxu1 %v4462_v10 }
 0x387   :  { %3840 = vmatprep.subr.mxu1 %v4470_v14 }
 0x388   :  { %3841 = vmatpush3.msra.mxu1 %v4470_v14 }
 0x389   :  { %3842 = vmatprep.subr.mxu1 %v4478_v16 }
 0x38a   :  { %3843 = vmatpush3.msra.mxu1 %v4478_v16 }
 0x38b   :  { %3844 = vmatprep.subr.mxu1 %v4486_v18 }
 0x38c   :  { %3845 = vmatpush3.msra.mxu1 %v4486_v18 }
 0x38d   :  { %3846 = vmatprep.subr.mxu1 %v4494_v20 }
 0x38e   :  { %3847 = vmatpush3.msra.mxu1 %v4494_v20 }
 0x38f   :  { %3848 = vmatprep.subr.mxu1 %v4502_v21 }
 0x390   :  { %3849 = vmatpush3.msra.mxu1 %v4502_v21 }
 0x391   :  { %3850 = vmatprep.subr.mxu1 %v4508_v22 }
 0x392   :  { %3851 = vmatpush3.msra.mxu1 %v4508_v22 }
 0x393   :  { %3852 = vmatprep.subr.mxu1 %v4513_v23 }
 0x394   :  { %3853 = vmatpush3.msra.mxu1 %v4513_v23 }
 0x395   :  { %3867 = vmatprep.subr.mxu1 %v4186_v36 }
 0x40d   :  { %v3687_v44 = vpop.f32.mrf.mxu1 }
 0x40e   :  { %v1181_v45 = vadd.f32 %v3687_v44, %v1108_v42 }
 0x40f   :  { %v1175_v48 = vpop.f32.mrf.mxu1 }
 0x410   :  { %v1176_v49 = vadd.f32 %v1175_v48, %v1108_v42  ;;  %v1195_v52 = vmax.f32 %v1181_v45, 0.0 }
 0x411   :  { %v3690_v50 = vpop.f32.mrf.mxu1 }
 0x412   :  { %v1194_v51 = vmax.f32 %v1176_v49, 0.0  ;;  %v1191_v53 = vadd.f32 %v3690_v50, %v1108_v42 }
 0x413   :  { %v1185_v54 = vpop.f32.mrf.mxu1 }
 0x414   :  { %v1186_v55 = vadd.f32 %v1185_v54, %v1108_v42  ;;  %3723 = vmatprep.mubr.f32.mxu0 %v1194_v51  ;;  %v1197_v59 = vmax.f32 %v1191_v53, 0.0  ;;  %v1216_v42 = vsub.s32 6, %v4303_v43 }
 0x415   :  { %3724 = vmatmul.mubr.f32.vlgmr.msra.gmra.mxu0 %v1195_v52 }
 0x416   :  { %v1196_v58 = vmax.f32 %v1186_v55, 0.0  ;;  %3765 = vmatpush3.msra.mxu0 %v4186_v36  ;;  %v1217_v44 = vrot.slane %v4313_v47, %v1216_v42 }
 0x417   :  { %3774 = vmatprep.subr.mxu0 %v4186_v36 }
 0x418   :  { %3726 = vmatprep.mubr.f32.mxu0 %v1196_v58 }
 0x419   :  { %3727 = vmatmul.mubr.f32.gmra.mxu0 %v1197_v59 }
 0x41a   :  { %3766 = vmatprep.mubr.msk.f32.mxu0 %vm59_vm0, %v4241_v1  ;;  %v4426_v1 = vld [vmem:[#allocation2 + $0x320] sm:$0xff] }
 0x41d   :  { %3767 = vmatmul.mubr.msk.f32.vlgmr.msra.gmra.mxu0 %vm59_vm0, %v4246_v2  ;;  %v4430_v2 = vld [vmem:[#allocation2 + $0x318] sm:$0xff] }
 0x41e   :  { %3775 = vmatpush3.msra.mxu0 %v4186_v36  ;;  %3776 = vmatprep.mubr.msk.f32.mxu0 %vm59_vm0, %v4280_v9  ;;  %v4434_v9 = vld [vmem:[#allocation2 + $0x310] sm:$0xff] }
 0x41f   :  { %3784 = vmatprep.subr.mxu0 %v4413_v60 }
 0x421   :  { %3777 = vmatmul.mubr.msk.f32.vlgmr.msra.gmra.mxu0 %vm59_vm0, %v4293_v12  ;;  %v4438_v12 = vld [vmem:[#allocation2 + $0x308] sm:$0xff] }
 0x422   :  { %3785 = vmatpush3.msra.mxu0 %v4413_v60 }
 0x423   :  { %3786 = vmatprep.subr.mxu0 %v4421_v61 }
 0x424   :  { %3787 = vmatpush3.msra.mxu0 %v4421_v61 }
 0x425   :  { %3788 = vmatprep.subr.mxu0 %v4426_v1 }
 0x426   :  { %3789 = vmatpush3.msra.mxu0 %v4426_v1 }
 0x427   :  { %3790 = vmatprep.subr.mxu0 %v4430_v2 }
 0x428   :  { %3791 = vmatpush3.msra.mxu0 %v4430_v2 }
 0x429   :  { %3792 = vmatprep.subr.mxu0 %v4434_v9 }
 0x42a   :  { %3793 = vmatpush3.msra.mxu0 %v4434_v9 }
 0x42b   :  { %3794 = vmatprep.subr.mxu0 %v4438_v12 }
 0x42c   :  { %3795 = vmatpush3.msra.mxu0 %v4438_v12 }
 0x42d   :  { %3796 = vmatprep.subr.mxu0 %v4442_v62  ;;  %v4518_v24 = vpop.f32.mrf.mxu1 }
 0x42e   :  { %3797 = vmatpush3.msra.mxu0 %v4442_v62 }
 0x42f   :  { %3798 = vmatprep.subr.mxu0 %v4446_v63  ;;  %v4520_v25 = vpop.f32.mrf.mxu1 }
 0x430   :  { %3799 = vmatpush3.msra.mxu0 %v4446_v63 }
 0x431   :  { %3800 = vmatprep.subr.mxu0 %v4450_v0  ;;  %v3773_v28 = vpop.f32.mrf.mxu1 }
 0x432   :  { %3801 = vmatpush3.msra.mxu0 %v4450_v0 }
 0x433   :  { %3802 = vmatprep.subr.mxu0 %v4454_v3  ;;  %v1539_v31 = vpop.f32.mrf.mxu1 }
 0x434   :  { %3803 = vmatpush3.msra.mxu0 %v4454_v3 }
 0x435   :  { %3804 = vmatprep.subr.mxu0 %v4460_v8  ;;  %v3783_v34 = vpop.f32.mrf.mxu1 }
 0x436   :  { %3805 = vmatpush3.msra.mxu0 %v4460_v8 }
 0x437   :  { %3806 = vmatprep.subr.mxu0 %v4468_v13  ;;  %v1689_v41 = vpop.f32.mrf.mxu1 }
 0x438   :  { %3807 = vmatpush3.msra.mxu0 %v4468_v13 }
 0x439   :  { %3808 = vmatprep.subr.mxu0 %v4476_v15 }
 0x43a   :  { %3809 = vmatpush3.msra.mxu0 %v4476_v15 }
 0x43b   :  { %3810 = vmatprep.subr.mxu0 %v4484_v17 }
 0x43c   :  { %3811 = vmatpush3.msra.mxu0 %v4484_v17 }
 0x43d   :  { %3812 = vmatprep.subr.mxu0 %v4492_v19 }
 0x43e   :  { %3813 = vmatpush3.msra.mxu0 %v4492_v19 }
 0x43f   :  { %3814 = vmatprep.subr.mxu0 %v4500_v57 }
 0x440   :  { %3815 = vmatpush3.msra.mxu0 %v4500_v57 }
 0x441   :  { %3860 = vmatprep.subr.mxu0 %v4186_v36 }
 0x4d5   :  { %v3725_v26 = vpop.f32.mrf.mxu0 }
 0x4d6   :  { %v4528_v48 = vadd.f32 %v3725_v26, %v1217_v44 }
 0x4d7   :  { %v1284_v27 = vpop.f32.mrf.mxu0 }
 0x4d8   :  { %v4530_v50 = vadd.f32 %v1284_v27, %v1217_v44 }
 0x4d9   :  { %v3728_v29 = vpop.f32.mrf.mxu0 }
 0x4da   :  { %v4533_v54 = vadd.f32 %v3728_v29, %v1217_v44  ;;  %v4543_v29 = vld [vmem:[%s4792_s1] sm:$0xff] }
 0x4db   :  { %v1294_v30 = vpop.f32.mrf.mxu0 }
 0x4dd   :  { %v3768_v32 = vpop.f32.mrf.mxu0 }
 0x4df   :  { %v1464_v33 = vpop.f32.mrf.mxu0 }
 0x4e0   :  { %3816 = vmatprep.mubr.f32.mxu0 %v1464_v33 }
 0x4e1   :  { %v3778_v35 = vpop.f32.mrf.mxu0  ;;  %3817 = vmatmul.mubr.f32.vlgmr.msra.gmra.mxu0 %v3768_v32 }
 0x4e2   :  { %3819 = vmatprep.mubr.f32.mxu0 %v1539_v31  ;;  %v4536_v31 = vadd.f32 %v1294_v30, %v1217_v44  ;;  %v4548_v44 = vld [vmem:[#allocation2 + $0x4a8] sm:$0xff] }
 0x4e3   :  { %v1614_v56 = vpop.f32.mrf.mxu0 }
 0x4e4   :  { %3854 = vmatprep.mubr.f32.mxu1 %v1614_v56  ;;  %v4545_v56 = vld [vmem:[#allocation2 + $0x4b0] sm:$0xff] }
 0x4e5   :  { %3820 = vmatmul.mubr.f32.gmra.mxu0 %v3773_v28  ;;  %3855 = vmatmul.mubr.f32.vlgmr.msra.gmra.mxu1 %v3778_v35 }
 0x4e6   :  { %3857 = vmatprep.mubr.f32.mxu1 %v1689_v41  ;;  %3864 = vmatprep.mubr.msk.f32.mxu0 %vm4187_vm2, %v4186_v36 }
 0x4e9   :  { %3858 = vmatmul.mubr.f32.gmra.mxu1 %v3783_v34 }
 0x4ea   :  { %3871 = vmatprep.mubr.msk.f32.mxu1 %vm4187_vm2, %v4186_v36 }
 0x5a1   :  { %v3818_v45 = vpop.f32.mrf.mxu0 }
 0x5a2   :  { %v1800_v51 = vadd.f32 %v3818_v45, %v4528_v48 }
 0x5a3   :  { %v1780_v49 = vpop.f32.mrf.mxu0 }
 0x5a4   :  { %v1799_v55 = vadd.f32 %v1780_v49, %v4530_v50  ;;  %v4556_v49 = vld [vmem:[%s4792_s1 + $0x8] sm:$0xff] }
 0x5a5   :  { %v3821_v52 = vpop.f32.mrf.mxu0  ;;  %v3856_v53 = vpop.f32.mrf.mxu1 }
 0x5a6   :  { %v1905_v58 = vadd.f32 %v3856_v53, %v1800_v51  ;;  %v1802_v47 = vadd.f32 %v3821_v52, %v4533_v54  ;;  %v4559_v51 = vld [vmem:[#allocation2 + $0x4a0] sm:$0xff]  ;;  %v4564_v52 = vld [vmem:[#allocation2 + $0x498] sm:$0xff]  ;;  %v4570_v53 = vld [vmem:[#allocation2 + $0x490] sm:$0xff] }
 0x5a7   :  { %v1790_v59 = vpop.f32.mrf.mxu0  ;;  %v1885_v28 = vpop.f32.mrf.mxu1 }
 0x5a8   :  { %v1909_v26 = vmax.f32 %v1905_v58, 0.0  ;;  %v1904_v32 = vadd.f32 %v1885_v28, %v1799_v55  ;;  %v1801_v27 = vadd.f32 %v1790_v59, %v4536_v31  ;;  %v4130_v55 = vld [vmem:[%s4793_s2] sm:$0xff]  ;;  %v4578_v58 = vld [vmem:[#allocation2 + $0x488] sm:$0xff]  ;;  %v4586_v28 = vld [vmem:[#allocation2 + $0x478] sm:$0xff] }
 0x5a9   :  { %v3859_v33 = vpop.f32.mrf.mxu1  ;;  %v4582_v59 = vld [vmem:[#allocation2 + $0x480] sm:$0xff] }
 0x5aa   :  { %v1908_v34 = vmax.f32 %v1904_v32, 0.0  ;;  %v1907_v35 = vadd.f32 %v3859_v33, %v1802_v47  ;;  %3861 = vmatpush3.msra.mxu0 %v1909_v26  ;;  %v4590_v47 = vld [vmem:[#allocation2 + $0x470] sm:$0xff]  ;;  %v4594_v26 = vld [vmem:[#allocation2 + $0x468] sm:$0xff]  ;;  %v4598_v32 = vld [vmem:[#allocation2 + $0x460] sm:$0xff] }
 0x5ab   :  { %v1895_v41 = vpop.f32.mrf.mxu1  ;;  %3862 = vmatprep.subr.mxu0 %v4186_v36  ;;  %v4602_v33 = vld [vmem:[#allocation2 + $0x458] sm:$0xff] }
 0x5ac   :  { %v1911_v30 = vmax.f32 %v1907_v35, 0.0  ;;  %v1906_v42 = vadd.f32 %v1895_v41, %v1801_v27  ;;  %3863 = vmatpush3.msra.mxu0 %v1908_v34  ;;  %v4606_v27 = vld [vmem:[#allocation2 + $0x450] sm:$0xff]  ;;  %v4610_v34 = vld [vmem:[#allocation2 + $0x448] sm:$0xff]  ;;  %v4616_v35 = vld [vmem:[#allocation2 + $0x440] sm:$0xff] }
 0x5ad   :  { %3865 = vmatmul.mubr.msk.f32.vlgmr.msra.gmra.mxu0 %vm390_vm1, %v4543_v29  ;;  %3874 = vmatprep.subr.mxu0 %v4545_v56  ;;  %v4620_v41 = vld [vmem:[#allocation2 + $0x438] sm:$0xff] }
 0x5ae   :  { %v1910_v45 = vmax.f32 %v1906_v42, 0.0  ;;  %3868 = vmatpush3.msra.mxu1 %v1911_v30  ;;  %3875 = vmatpush3.msra.mxu0 %v4545_v56 }
 0x5af   :  { %3869 = vmatprep.subr.mxu1 %v4186_v36  ;;  %3876 = vmatprep.subr.mxu0 %v4548_v44 }
 0x5b0   :  { %3870 = vmatpush3.msra.mxu1 %v1910_v45  ;;  %3877 = vmatpush3.msra.mxu0 %v4548_v44 }
 0x5b1   :  { %3872 = vmatmul.mubr.msk.f32.vlgmr.msra.gmra.mxu1 %vm390_vm1, %v4556_v49  ;;  %3878 = vmatprep.subr.mxu0 %v4559_v51 }
 0x5b2   :  { %3879 = vmatpush3.msra.mxu0 %v4559_v51  ;;  %3911 = vmatprep.mubr.msk.f32.mxu1 %vm59_vm0, %v4130_v55 }
 0x5b3   :  { %3880 = vmatprep.subr.mxu0 %v4564_v52 }
 0x5b4   :  { %3881 = vmatpush3.msra.mxu0 %v4564_v52 }
 0x5b5   :  { %3882 = vmatprep.subr.mxu0 %v4570_v53 }
 0x5b6   :  { %3883 = vmatpush3.msra.mxu0 %v4570_v53 }
 0x5b7   :  { %3884 = vmatprep.subr.mxu0 %v4578_v58 }
 0x5b8   :  { %3885 = vmatpush3.msra.mxu0 %v4578_v58 }
 0x5b9   :  { %3886 = vmatprep.subr.mxu0 %v4582_v59 }
 0x5ba   :  { %3887 = vmatpush3.msra.mxu0 %v4582_v59 }
 0x5bb   :  { %3888 = vmatprep.subr.mxu0 %v4586_v28 }
 0x5bc   :  { %3889 = vmatpush3.msra.mxu0 %v4586_v28 }
 0x5bd   :  { %3890 = vmatprep.subr.mxu0 %v4590_v47 }
 0x5be   :  { %3891 = vmatpush3.msra.mxu0 %v4590_v47 }
 0x5bf   :  { %3892 = vmatprep.subr.mxu0 %v4594_v26 }
 0x5c0   :  { %3893 = vmatpush3.msra.mxu0 %v4594_v26 }
 0x5c1   :  { %3894 = vmatprep.subr.mxu0 %v4598_v32 }
 0x5c2   :  { %3895 = vmatpush3.msra.mxu0 %v4598_v32 }
 0x5c3   :  { %3896 = vmatprep.subr.mxu0 %v4602_v33 }
 0x5c4   :  { %3897 = vmatpush3.msra.mxu0 %v4602_v33 }
 0x5c5   :  { %3898 = vmatprep.subr.mxu0 %v4606_v27 }
 0x5c6   :  { %3899 = vmatpush3.msra.mxu0 %v4606_v27 }
 0x5c7   :  { %3900 = vmatprep.subr.mxu0 %v4610_v34 }
 0x5c8   :  { %3901 = vmatpush3.msra.mxu0 %v4610_v34 }
 0x5c9   :  { %3902 = vmatprep.subr.mxu0 %v4616_v35 }
 0x5ca   :  { %3903 = vmatpush3.msra.mxu0 %v4616_v35 }
 0x5cb   :  { %3904 = vmatprep.subr.mxu0 %v4620_v41 }
 0x5cc   :  { %3905 = vmatpush3.msra.mxu0 %v4620_v41 }
 0x5cd   :  { %3967 = vmatprep.subr.mxu0 %v4375_v4 }
 0x66d   :  { %v1981_v30 = vpop.f32.mrf.mxu0 }
 0x66e   :  { %3906 = vmatprep.mubr.f32.mxu0 %v1981_v30 }
 0x66f   :  { %v3866_v42 = vpop.f32.mrf.mxu0 }
 0x671   :  { %v2054_v45 = vpop.f32.mrf.mxu1 }
 0x672   :  { %3907 = vmatmul.mubr.f32.vlgmr.msra.gmra.mxu0 %v2054_v45 }
 0x673   :  { %v3873_v55 = vpop.f32.mrf.mxu1  ;;  %3968 = vmatpush3.msra.mxu0 %v4375_v4  ;;  %v1321_v4 = vsub.s32 7, %v4303_v43 }
 0x674   :  { %3969 = vmatprep.subr.mxu0 %v4377_v37 }
 0x675   :  { %3970 = vmatpush3.msra.mxu0 %v4377_v37  ;;  %v4131_v37 = vld [vmem:[%s4797_s6] sm:$0xff] }
 0x676   :  { %3971 = vmatprep.subr.mxu0 %v4381_v38 }
 0x677   :  { %3972 = vmatpush3.msra.mxu0 %v4381_v38  ;;  %v1322_v38 = vrot.slane %v4131_v37, %v1321_v4 }
 0x678   :  { %3973 = vmatprep.subr.mxu0 %v4385_v6 }
 0x679   :  { %3974 = vmatpush3.msra.mxu0 %v4385_v6 }
 0x67a   :  { %3975 = vmatprep.subr.mxu0 %v4389_v5 }
 0x67b   :  { %3976 = vmatpush3.msra.mxu0 %v4389_v5  ;;  %v4661_v5 = vadd.f32 %v4518_v24, %v1322_v38  ;;  %v4137_v24 = vld [vmem:[%s4794_s3 + $0x10] sm:$0xff] }
 0x67c   :  { %3977 = vmatprep.subr.mxu0 %v4393_v7 }
 0x67d   :  { %3978 = vmatpush3.msra.mxu0 %v4393_v7  ;;  %v4664_v7 = vadd.f32 %v4520_v25, %v1322_v38  ;;  %v4138_v25 = vld [vmem:[%s4794_s3 + $0x18] sm:$0xff] }
 0x67e   :  { %3979 = vmatprep.subr.mxu0 %v4397_v39 }
 0x67f   :  { %3980 = vmatpush3.msra.mxu0 %v4397_v39 }
 0x680   :  { %3981 = vmatprep.subr.mxu0 %v4401_v40 }
 0x681   :  { %3982 = vmatpush3.msra.mxu0 %v4401_v40 }
 0x682   :  { %3983 = vmatprep.subr.mxu0 %v4462_v10 }
 0x683   :  { %3984 = vmatpush3.msra.mxu0 %v4462_v10 }
 0x684   :  { %3985 = vmatprep.subr.mxu0 %v4470_v14 }
 0x685   :  { %3986 = vmatpush3.msra.mxu0 %v4470_v14 }
 0x686   :  { %3987 = vmatprep.subr.mxu0 %v4478_v16 }
 0x687   :  { %3988 = vmatpush3.msra.mxu0 %v4478_v16 }
 0x688   :  { %3989 = vmatprep.subr.mxu0 %v4486_v18 }
 0x689   :  { %3990 = vmatpush3.msra.mxu0 %v4486_v18  ;;  %v4132_v18 = vld [vmem:[%s4793_s2 + $0x8] sm:$0xff] }
 0x68a   :  { %3991 = vmatprep.subr.mxu0 %v4494_v20 }
 0x68b   :  { %3992 = vmatpush3.msra.mxu0 %v4494_v20  ;;  %v4133_v20 = vld [vmem:[%s4793_s2 + $0x10] sm:$0xff] }
 0x68c   :  { %3993 = vmatprep.subr.mxu0 %v4502_v21 }
 0x68d   :  { %3994 = vmatpush3.msra.mxu0 %v4502_v21  ;;  %v4134_v21 = vld [vmem:[%s4793_s2 + $0x18] sm:$0xff] }
 0x68e   :  { %3995 = vmatprep.subr.mxu0 %v4508_v22 }
 0x68f   :  { %3996 = vmatpush3.msra.mxu0 %v4508_v22  ;;  %v4135_v22 = vld [vmem:[%s4794_s3] sm:$0xff] }
 0x690   :  { %3997 = vmatprep.subr.mxu0 %v4513_v23 }
 0x691   :  { %3998 = vmatpush3.msra.mxu0 %v4513_v23  ;;  %v4136_v23 = vld [vmem:[%s4794_s3 + $0x8] sm:$0xff] }
 0x732   :  { %v3908_v6 = vpop.f32.mrf.mxu0 }
 0x733   :  { %v2150_v40 = vadd.f32 %v3908_v6, %v4661_v5 }
 0x734   :  { %v2140_v39 = vpop.f32.mrf.mxu0 }
 0x735   :  { %v2149_v10 = vadd.f32 %v2140_v39, %v4664_v7  ;;  %v2152_v16 = vmax.f32 %v2150_v40, 0.0 }
 0x737   :  { %v2151_v14 = vmax.f32 %v2149_v10, 0.0  ;;  %v3013_v10 = vld [vmem:[#allocation2 + $0x5a8] sm:$0xff] }
 0x739   :  { %3909 = vmatprep.subr.mxu1 %v2151_v14 }
 0x73a   :  { %3910 = vmatpush3.msra.mxu1 %v2151_v14 }
 0x73b   :  { %3912 = vmatmul.mubr.msk.f32.vlgmr.msra.gmra.mxu1 %vm59_vm0, %v4132_v18  ;;  %3914 = vmatprep.subr.mxu1 %v2152_v16  ;;  %v3010_v18 = vld [vmem:[#allocation2 + $0x590] sm:$0xff] }
 0x73c   :  { %3915 = vmatpush3.msra.mxu1 %v2152_v16  ;;  %3916 = vmatprep.mubr.msk.f32.mxu1 %vm59_vm0, %v4133_v20  ;;  %v3009_v20 = vld [vmem:[#allocation2 + $0x588] sm:$0xff] }
 0x73d   :  { %3919 = vmatprep.subr.mxu1 %v2151_v14 }
 0x73f   :  { %3917 = vmatmul.mubr.msk.f32.vlgmr.msra.gmra.mxu1 %vm59_vm0, %v4134_v21  ;;  %v3008_v21 = vld [vmem:[#allocation2 + $0x580] sm:$0xff] }
 0x740   :  { %3920 = vmatpush3.msra.mxu1 %v2151_v14  ;;  %3921 = vmatprep.mubr.msk.f32.mxu1 %vm59_vm0, %v4135_v22  ;;  %v3012_v14 = vld [vmem:[#allocation2 + $0x5a0] sm:$0xff]  ;;  %v3007_v22 = vld [vmem:[#allocation2 + $0x578] sm:$0xff] }
 0x741   :  { %3924 = vmatprep.subr.mxu1 %v2152_v16 }
 0x743   :  { %3922 = vmatmul.mubr.msk.f32.vlgmr.msra.gmra.mxu1 %vm59_vm0, %v4136_v23  ;;  %v3006_v23 = vld [vmem:[#allocation2 + $0x570] sm:$0xff] }
 0x744   :  { %3925 = vmatpush3.msra.mxu1 %v2152_v16  ;;  %3926 = vmatprep.mubr.msk.f32.mxu1 %vm59_vm0, %v4137_v24  ;;  %v3011_v16 = vld [vmem:[#allocation2 + $0x598] sm:$0xff]  ;;  %v3005_v24 = vld [vmem:[#allocation2 + $0x568] sm:$0xff] }
 0x745   :  { %3929 = vmatprep.subr.mxu1 %v4413_v60 }
 0x747   :  { %3927 = vmatmul.mubr.msk.f32.vlgmr.msra.gmra.mxu1 %vm59_vm0, %v4138_v25  ;;  %v3004_v25 = vld [vmem:[#allocation2 + $0x560] sm:$0xff] }
 0x748   :  { %3930 = vmatpush3.msra.mxu1 %v4413_v60 }
 0x749   :  { %3931 = vmatprep.subr.mxu1 %v4421_v61 }
 0x74a   :  { %3932 = vmatpush3.msra.mxu1 %v4421_v61 }
 0x74b   :  { %3933 = vmatprep.subr.mxu1 %v4426_v1 }
 0x74c   :  { %3934 = vmatpush3.msra.mxu1 %v4426_v1 }
 0x74d   :  { %3935 = vmatprep.subr.mxu1 %v4430_v2 }
 0x74e   :  { %3936 = vmatpush3.msra.mxu1 %v4430_v2 }
 0x74f   :  { %3937 = vmatprep.subr.mxu1 %v4434_v9 }
 0x750   :  { %3938 = vmatpush3.msra.mxu1 %v4434_v9 }
 0x751   :  { %3939 = vmatprep.subr.mxu1 %v4438_v12 }
 0x752   :  { %3940 = vmatpush3.msra.mxu1 %v4438_v12 }
 0x753   :  { %3941 = vmatprep.subr.mxu1 %v4442_v62 }
 0x754   :  { %3942 = vmatpush3.msra.mxu1 %v4442_v62 }
 0x755   :  { %3943 = vmatprep.subr.mxu1 %v4446_v63 }
 0x756   :  { %3944 = vmatpush3.msra.mxu1 %v4446_v63 }
 0x757   :  { %3945 = vmatprep.subr.mxu1 %v4450_v0 }
 0x758   :  { %3946 = vmatpush3.msra.mxu1 %v4450_v0 }
 0x759   :  { %3947 = vmatprep.subr.mxu1 %v4454_v3 }
 0x75a   :  { %3948 = vmatpush3.msra.mxu1 %v4454_v3 }
 0x75b   :  { %3949 = vmatprep.subr.mxu1 %v4460_v8 }
 0x75c   :  { %3950 = vmatpush3.msra.mxu1 %v4460_v8 }
 0x75d   :  { %3951 = vmatprep.subr.mxu1 %v4468_v13 }
 0x75e   :  { %3952 = vmatpush3.msra.mxu1 %v4468_v13 }
 0x75f   :  { %3953 = vmatprep.subr.mxu1 %v4476_v15 }
 0x760   :  { %3954 = vmatpush3.msra.mxu1 %v4476_v15 }
 0x761   :  { %3955 = vmatprep.subr.mxu1 %v4484_v17 }
 0x762   :  { %3956 = vmatpush3.msra.mxu1 %v4484_v17 }
 0x763   :  { %3957 = vmatprep.subr.mxu1 %v4492_v19 }
 0x764   :  { %3958 = vmatpush3.msra.mxu1 %v4492_v19 }
 0x765   :  { %3959 = vmatprep.subr.mxu1 %v4500_v57 }
 0x766   :  { %3960 = vmatpush3.msra.mxu1 %v4500_v57 }
 0x767   :  { %4005 = vmatprep.subr.mxu1 %v4186_v36 }
 0x7fb   :  { %v3913_v60 = vpop.f32.mrf.mxu1 }
 0x7fd   :  { %v2219_v61 = vpop.f32.mrf.mxu1 }
 0x7fe   :  { %3961 = vmatprep.mubr.f32.mxu1 %v2219_v61 }
 0x7ff   :  { %v3918_v1 = vpop.f32.mrf.mxu1  ;;  %3962 = vmatmul.mubr.f32.vlgmr.msra.gmra.mxu1 %v3913_v60  ;;  %v3003_v60 = vld [vmem:[#allocation2 + $0x558] sm:$0xff] }
 0x801   :  { %v2294_v2 = vpop.f32.mrf.mxu1 }
 0x802   :  { %3964 = vmatprep.mubr.f32.mxu1 %v2294_v2 }
 0x803   :  { %v3923_v9 = vpop.f32.mrf.mxu1  ;;  %3965 = vmatmul.mubr.f32.gmra.mxu1 %v3918_v1 }
 0x804   :  { %4009 = vmatprep.mubr.msk.f32.mxu1 %vm4187_vm2, %v4186_v36 }
 0x805   :  { %v2369_v12 = vpop.f32.mrf.mxu1 }
 0x806   :  { %3999 = vmatprep.mubr.f32.mxu0 %v2369_v12 }
 0x807   :  { %v3928_v62 = vpop.f32.mrf.mxu1  ;;  %4000 = vmatmul.mubr.f32.vlgmr.msra.gmra.mxu0 %v3923_v9 }
 0x809   :  { %v2444_v63 = vpop.f32.mrf.mxu1 }
 0x80a   :  { %4002 = vmatprep.mubr.f32.mxu0 %v2444_v63  ;;  %v3002_v63 = vld [vmem:[#allocation2 + $0x550] sm:$0xff] }
 0x80b   :  { %4003 = vmatmul.mubr.f32.gmra.mxu0 %v3928_v62 }
 0x8bf   :  { %v3963_v0 = vpop.f32.mrf.mxu1 }
 0x8c0   :  { %v2555_v13 = vadd.f32 %v3963_v0, %v4528_v48  ;;  %v3001_v0 = vld [vmem:[#allocation2 + $0x548] sm:$0xff] }
 0x8c1   :  { %v2535_v3 = vpop.f32.mrf.mxu1 }
 0x8c2   :  { %v2554_v17 = vadd.f32 %v2535_v3, %v4530_v50  ;;  %v3000_v3 = vld [vmem:[#allocation2 + $0x540] sm:$0xff] }
 0x8c3   :  { %v3966_v8 = vpop.f32.mrf.mxu1 }
 0x8c4   :  { %v2557_v42 = vadd.f32 %v3966_v8, %v4533_v54  ;;  %v2916_v54 = vld [vmem:[#allocation2 + $0x528] sm:$0xff]  ;;  %v2999_v8 = vld [vmem:[#allocation2 + $0x538] sm:$0xff] }
 0x8c5   :  { %v2545_v57 = vpop.f32.mrf.mxu1 }
 0x8c6   :  { %v2556_v37 = vadd.f32 %v2545_v57, %v4536_v31  ;;  %v2915_v31 = vld [vmem:[#allocation2 + $0x520] sm:$0xff] }
 0x8c7   :  { %v4001_v15 = vpop.f32.mrf.mxu0 }
 0x8c8   :  { %v2660_v19 = vadd.f32 %v4001_v15, %v2555_v13 }
 0x8c9   :  { %v2640_v30 = vpop.f32.mrf.mxu0 }
 0x8ca   :  { %v2664_v45 = vmax.f32 %v2660_v19, 0.0  ;;  %v2659_v55 = vadd.f32 %v2640_v30, %v2554_v17 }
 0x8cb   :  { %v4004_v4 = vpop.f32.mrf.mxu0 }
 0x8cc   :  { %v2663_v38 = vmax.f32 %v2659_v55, 0.0  ;;  %v2662_v6 = vadd.f32 %v4004_v4, %v2557_v42  ;;  %4006 = vmatpush3.msra.mxu1 %v2664_v45 }
 0x8cd   :  { %v2650_v39 = vpop.f32.mrf.mxu0  ;;  %4007 = vmatprep.subr.mxu1 %v4186_v36 }
 0x8ce   :  { %v2666_v48 = vmax.f32 %v2662_v6, 0.0  ;;  %v2661_v40 = vadd.f32 %v2650_v39, %v2556_v37  ;;  %4008 = vmatpush3.msra.mxu1 %v2663_v38 }
 0x8cf   :  { %4010 = vmatmul.mubr.msk.f32.vlgmr.msra.gmra.mxu1 %vm390_vm1, %v4543_v29  ;;  %4012 = vmatprep.subr.mxu1 %v4186_v36  ;;  %v2914_v29 = vld [vmem:[#allocation2 + $0x518] sm:$0xff] }
 0x8d0   :  { %v2665_v50 = vmax.f32 %v2661_v40, 0.0  ;;  %4013 = vmatpush3.msra.mxu1 %v2666_v48  ;;  %4016 = vmatprep.mubr.msk.f32.mxu1 %vm4187_vm2, %v4186_v36 }
 0x8d1   :  { %4014 = vmatprep.subr.mxu1 %v4186_v36  ;;  %v2917_v36 = vld [vmem:[#allocation2 + $0x530] sm:$0xff] }
 0x8d2   :  { %4015 = vmatpush3.msra.mxu1 %v2665_v50  ;;  %4054 = vmatprep.subr.mxu0 %v2917_v36 }
 0x8d3   :  { %4017 = vmatmul.mubr.msk.f32.vlgmr.msra.gmra.mxu1 %vm390_vm1, %v4556_v49  ;;  %4019 = vmatprep.subr.mxu1 %v4545_v56  ;;  %v2911_v49 = vld [vmem:[#allocation2 + $0x500] sm:$0xff] }
 0x8d4   :  { %4020 = vmatpush3.msra.mxu1 %v4545_v56  ;;  %4055 = vmatpush3.msra.mxu0 %v2917_v36  ;;  %v2913_v56 = vld [vmem:[#allocation2 + $0x510] sm:$0xff] }
 0x8d5   :  { %4021 = vmatprep.subr.mxu1 %v4548_v44  ;;  %4056 = vmatprep.subr.mxu0 %v2916_v54 }
 0x8d6   :  { %4022 = vmatpush3.msra.mxu1 %v4548_v44  ;;  %4057 = vmatpush3.msra.mxu0 %v2916_v54  ;;  %v2912_v44 = vld [vmem:[#allocation2 + $0x508] sm:$0xff] }
 0x8d7   :  { %4023 = vmatprep.subr.mxu1 %v4559_v51  ;;  %4058 = vmatprep.subr.mxu0 %v2915_v31 }
 0x8d8   :  { %4024 = vmatpush3.msra.mxu1 %v4559_v51  ;;  %4059 = vmatpush3.msra.mxu0 %v2915_v31  ;;  %v2910_v51 = vld [vmem:[#allocation2 + $0x4f8] sm:$0xff] }
 0x8d9   :  { %4025 = vmatprep.subr.mxu1 %v4564_v52  ;;  %4060 = vmatprep.subr.mxu0 %v2914_v29 }
 0x8da   :  { %4026 = vmatpush3.msra.mxu1 %v4564_v52  ;;  %4061 = vmatpush3.msra.mxu0 %v2914_v29  ;;  %v2909_v52 = vld [vmem:[#allocation2 + $0x4f0] sm:$0xff] }
 0x8db   :  { %4027 = vmatprep.subr.mxu1 %v4570_v53  ;;  %4062 = vmatprep.subr.mxu0 %v2913_v56 }
 0x8dc   :  { %4028 = vmatpush3.msra.mxu1 %v4570_v53  ;;  %4063 = vmatpush3.msra.mxu0 %v2913_v56  ;;  %v2908_v53 = vld [vmem:[#allocation2 + $0x4e8] sm:$0xff] }
 0x8dd   :  { %4029 = vmatprep.subr.mxu1 %v4578_v58  ;;  %4064 = vmatprep.subr.mxu0 %v2912_v44 }
 0x8de   :  { %4030 = vmatpush3.msra.mxu1 %v4578_v58  ;;  %4065 = vmatpush3.msra.mxu0 %v2912_v44  ;;  %v2907_v58 = vld [vmem:[#allocation2 + $0x4e0] sm:$0xff] }
 0x8df   :  { %4031 = vmatprep.subr.mxu1 %v4582_v59  ;;  %4066 = vmatprep.subr.mxu0 %v2911_v49 }
 0x8e0   :  { %4032 = vmatpush3.msra.mxu1 %v4582_v59  ;;  %4067 = vmatpush3.msra.mxu0 %v2911_v49  ;;  %v2906_v59 = vld [vmem:[#allocation2 + $0x4d8] sm:$0xff] }
 0x8e1   :  { %4033 = vmatprep.subr.mxu1 %v4586_v28  ;;  %4068 = vmatprep.subr.mxu0 %v2910_v51 }
 0x8e2   :  { %4034 = vmatpush3.msra.mxu1 %v4586_v28  ;;  %4069 = vmatpush3.msra.mxu0 %v2910_v51 }
 0x8e3   :  { %4035 = vmatprep.subr.mxu1 %v4590_v47  ;;  %4070 = vmatprep.subr.mxu0 %v2909_v52 }
 0x8e4   :  { %4036 = vmatpush3.msra.mxu1 %v4590_v47  ;;  %4071 = vmatpush3.msra.mxu0 %v2909_v52 }
 0x8e5   :  { %4037 = vmatprep.subr.mxu1 %v4594_v26  ;;  %4072 = vmatprep.subr.mxu0 %v2908_v53 }
 0x8e6   :  { %4038 = vmatpush3.msra.mxu1 %v4594_v26  ;;  %4073 = vmatpush3.msra.mxu0 %v2908_v53 }
 0x8e7   :  { %4039 = vmatprep.subr.mxu1 %v4598_v32  ;;  %4074 = vmatprep.subr.mxu0 %v2907_v58 }
 0x8e8   :  { %4040 = vmatpush3.msra.mxu1 %v4598_v32  ;;  %4075 = vmatpush3.msra.mxu0 %v2907_v58 }
 0x8e9   :  { %4041 = vmatprep.subr.mxu1 %v4602_v33  ;;  %4076 = vmatprep.subr.mxu0 %v2906_v59 }
 0x8ea   :  { %4042 = vmatpush3.msra.mxu1 %v4602_v33  ;;  %4077 = vmatpush3.msra.mxu0 %v2906_v59  ;;  %v2905_v33 = vld [vmem:[#allocation2 + $0x4d0] sm:$0xff] }
 0x8eb   :  { %4043 = vmatprep.subr.mxu1 %v4606_v27  ;;  %4078 = vmatprep.subr.mxu0 %v2905_v33 }
 0x8ec   :  { %4044 = vmatpush3.msra.mxu1 %v4606_v27  ;;  %4079 = vmatpush3.msra.mxu0 %v2905_v33  ;;  %v2904_v27 = vld [vmem:[#allocation2 + $0x4c8] sm:$0xff] }
 0x8ed   :  { %4045 = vmatprep.subr.mxu1 %v4610_v34  ;;  %4080 = vmatprep.subr.mxu0 %v2904_v27 }
 0x8ee   :  { %4046 = vmatpush3.msra.mxu1 %v4610_v34  ;;  %4081 = vmatpush3.msra.mxu0 %v2904_v27  ;;  %v2903_v34 = vld [vmem:[#allocation2 + $0x4c0] sm:$0xff] }
 0x8ef   :  { %4047 = vmatprep.subr.mxu1 %v4616_v35  ;;  %4082 = vmatprep.subr.mxu0 %v2903_v34 }
 0x8f0   :  { %4048 = vmatpush3.msra.mxu1 %v4616_v35  ;;  %v2902_v35 = vld [vmem:[#allocation2 + $0x4b8] sm:$0xff]  ;;  %4083 = vmatpush3.msra.mxu0 %v2903_v34 }
 0x8f1   :  { %4049 = vmatprep.subr.mxu1 %v4620_v41  ;;  %4084 = vmatprep.subr.mxu0 %v2902_v35 }
 0x8f2   :  { %4050 = vmatpush3.msra.mxu1 %v4620_v41  ;;  %4085 = vmatpush3.msra.mxu0 %v2902_v35  ;;  %v3014_v41 = vld [vmem:[#allocation2 + $0x5b0] sm:$0xff] }
 0x8f3   :  { %4089 = vmatprep.subr.mxu1 %v3014_v41 }
 0x98f   :  { %v2733_v28 = vpop.f32.mrf.mxu1 }
 0x990   :  { %4051 = vmatprep.mubr.f32.mxu1 %v2733_v28 }
 0x991   :  { %v4011_v47 = vpop.f32.mrf.mxu1 }
 0x993   :  { %v2803_v26 = vpop.f32.mrf.mxu1 }
 0x994   :  { %4052 = vmatmul.mubr.f32.vlgmr.msra.gmra.mxu1 %v2803_v26 }
 0x995   :  { %v4018_v32 = vpop.f32.mrf.mxu1  ;;  %4090 = vmatpush3.msra.mxu1 %v3014_v41 }
 0x996   :  { %4091 = vmatprep.subr.mxu1 %v3013_v10 }
 0x997   :  { %4092 = vmatpush3.msra.mxu1 %v3013_v10 }
 0x998   :  { %4093 = vmatprep.subr.mxu1 %v3012_v14 }
 0x999   :  { %4094 = vmatpush3.msra.mxu1 %v3012_v14 }
 0x99a   :  { %4095 = vmatprep.subr.mxu1 %v3011_v16 }
 0x99b   :  { %4096 = vmatpush3.msra.mxu1 %v3011_v16 }
 0x99c   :  { %4097 = vmatprep.subr.mxu1 %v3010_v18 }
 0x99d   :  { %4098 = vmatpush3.msra.mxu1 %v3010_v18 }
 0x99e   :  { %4099 = vmatprep.subr.mxu1 %v3009_v20 }
 0x99f   :  { %4100 = vmatpush3.msra.mxu1 %v3009_v20 }
 0x9a0   :  { %4101 = vmatprep.subr.mxu1 %v3008_v21 }
 0x9a1   :  { %4102 = vmatpush3.msra.mxu1 %v3008_v21 }
 0x9a2   :  { %4103 = vmatprep.subr.mxu1 %v3007_v22 }
 0x9a3   :  { %4104 = vmatpush3.msra.mxu1 %v3007_v22 }
 0x9a4   :  { %4105 = vmatprep.subr.mxu1 %v3006_v23 }
 0x9a5   :  { %4106 = vmatpush3.msra.mxu1 %v3006_v23 }
 0x9a6   :  { %4107 = vmatprep.subr.mxu1 %v3005_v24 }
 0x9a7   :  { %4108 = vmatpush3.msra.mxu1 %v3005_v24 }
 0x9a8   :  { %4109 = vmatprep.subr.mxu1 %v3004_v25 }
 0x9a9   :  { %4110 = vmatpush3.msra.mxu1 %v3004_v25 }
 0x9aa   :  { %4111 = vmatprep.subr.mxu1 %v3003_v60 }
 0x9ab   :  { %4112 = vmatpush3.msra.mxu1 %v3003_v60 }
 0x9ac   :  { %4113 = vmatprep.subr.mxu1 %v3002_v63 }
 0x9ad   :  { %4114 = vmatpush3.msra.mxu1 %v3002_v63 }
 0x9ae   :  { %4115 = vmatprep.subr.mxu1 %v3001_v0 }
 0x9af   :  { %4116 = vmatpush3.msra.mxu1 %v3001_v0 }
 0x9b0   :  { %4117 = vmatprep.subr.mxu1 %v3000_v3 }
 0x9b1   :  { %4118 = vmatpush3.msra.mxu1 %v3000_v3 }
 0x9b2   :  { %4119 = vmatprep.subr.mxu1 %v2999_v8 }
 0x9b3   :  { %4120 = vmatpush3.msra.mxu1 %v2999_v8 }
 0xa54   :  { %v4053_v61 = vpop.f32.mrf.mxu1 }
 0xa55   :  { %v2899_v1 = vadd.f32 %v4053_v61, %v4661_v5  ;;  %v42_v5 = vld [vmem:[%s4797_s6 + $0x8] sm:$0xff]  ;;  %s4159_s6 = scalar_lea.vmem %s3102_s13, 256 }
 0xa56   :  { %v2889_v2 = vpop.f32.mrf.mxu1  ;;  %v3018_v42 = vrot.slane %v42_v5, %v492_v11  ;;  %p4160_p5 = scmp.ne.s32.totalorder %s3102_s13, %s4159_s6  ;;  %p4165_p7 = scmp.lt.s32.totalorder %s4159_s6, %s4159_s6 }
 0xa57   :  { %v2898_v9 = vadd.f32 %v2889_v2, %v4664_v7  ;;  %v2901_v62 = vmax.f32 %v2899_v1, 0.0  ;;  %v2921_v7 = vrot.slane %v42_v5, %v388_v46 }
 0xa58   :  { %p4166_p8 = por %p4165_p7, %p4164_p6 }
 0xa59   :  { %v2900_v12 = vmax.f32 %v2898_v9, 0.0 }
 0xa5a   :  { %p4167_p9 = pnand %p4166_p8, %p4160_p5 }
 0xa5b   :  { %4086 = vmatprep.mubr.f32.mxu0 %v2900_v12 }
 0xa5c   :  { %4087 = vmatmul.mubr.f32.vlgmr.msra.gmra.mxu0 %v2901_v62 }
 0xb1c   :  { %v4088_v13 = vpop.f32.mrf.mxu0 }
 0xb1d   :  { %v2994_v15 = vadd.f32 %v4088_v13, %v2921_v7 }
 0xb1e   :  { %v2988_v17 = vpop.f32.mrf.mxu0 }
 0xb1f   :  { %v2989_v19 = vadd.f32 %v2988_v17, %v2921_v7  ;;  %v2998_v30 = vmax.f32 %v2994_v15, 0.0 }
 0xb21   :  { %v2997_v57 = vmax.f32 %v2989_v19, 0.0 }
 0xb23   :  { %4121 = vmatprep.mubr.f32.mxu1 %v2997_v57 }
 0xb24   :  { %4122 = vmatmul.mubr.f32.vlgmr.msra.gmra.mxu1 %v2998_v30 }
 0xbe4   :  { %v4123_v45 = vpop.f32.mrf.mxu1 }
 0xbe5   :  { %v3091_v55 = vadd.f32 %v4123_v45, %v3018_v42 }
 0xbe6   :  { %v3085_v4 = vpop.f32.mrf.mxu1 }
 0xbe7   :  { %3095 = vst [vmem:[#allocation5 + $0x8] sm:$0xff] %v3091_v55  ;;  %v3086_v37 = vadd.f32 %v3085_v4, %v3018_v42 }
 0xbe9   :  { %3094 = vst [vmem:[#allocation5] sm:$0xff] %v3086_v37 }
 0xbea   :  { %4170 = shalt.err (!%p4167_p9)
}
 0xbeb   :  { %3107 = dma.vmem_to_hbm [thread:$0]  %s3102_s13, 256, %s4798_s7, [#allocation4], %s4184_s27, %s4184_s27, %s4185_s28  }
 0xbec   :  { %4181 = dma.done.wait [#allocation4], 256  }
 0xbed   :  { %4182 = vsyncadd [#allocation4], 4294967040 }
 0xbee   :  { %3111 = vsyncpa [#allocation3], 1 }
 0xbef   :  { %3112 = vsyncpa [#allocation4], 1 }

</bundles_post_ra>
